<compile_context>
chip_gen: v6e
topology: v6e:2x2x1
jax: 0.10.0
libtpu: 0.0.40
codegen_flags: <defaults>
</compile_context>

<pallas_src>
import jax
import jax.numpy as jnp
from jax.experimental import pallas as pl
from jax.experimental.pallas import tpu as pltpu


# ----------------------- BatchNorm1d batch statistics (affine=False) ---------
def _row_tile(rows):
    # Largest row tile that divides `rows` and respects the (8, 128) sublane
    # constraint; fall back to a single full block for awkward row counts.
    for t in (1024, 512, 256, 128, 64, 32, 16, 8):
        if rows % t == 0:
            return t
    return rows


def bn_stats(x2d):
    """Tiled two-moment reduction: row 0 = mean, row 1 = rsqrt(var + eps)."""
    rows, d = x2d.shape
    tile = _row_tile(rows)
    inv_n = 1.0 / float(rows)

    def kernel(x_ref, stats_ref, acc_ref):
        i = pl.program_id(0)

        @pl.when(i == 0)
        def _init():
            acc_ref[...] = jnp.zeros_like(acc_ref)

        x = x_ref[...]                                           # (tile, D) f32
        acc_ref[...] += jnp.concatenate(
            [jnp.sum(x, axis=0, keepdims=True),
             jnp.sum(x * x, axis=0, keepdims=True)], axis=0)

        @pl.when(i == pl.num_programs(0) - 1)
        def _finalize():
            mean = acc_ref[0:1, :] * inv_n
            var = acc_ref[1:2, :] * inv_n - mean * mean          # biased (train mode)
            stats_ref[...] = jnp.concatenate(
                [mean, jax.lax.rsqrt(var + 1e-5)], axis=0)

    return pl.pallas_call(
        kernel,
        out_shape=jax.ShapeDtypeStruct((2, d), jnp.float32),
        grid_spec=pltpu.PrefetchScalarGridSpec(
            num_scalar_prefetch=0,
            grid=(rows // tile,),
            in_specs=[pl.BlockSpec((tile, d), lambda i: (i, 0))],
            out_specs=pl.BlockSpec((2, d), lambda i: (0, 0)),
            scratch_shapes=[pltpu.VMEM((2, d), jnp.float32)],
        ),
        compiler_params=pltpu.CompilerParams(
            dimension_semantics=("arbitrary",)),
    )(x2d)


# ----------------------- fused GCN: BN-apply + 4x GraphConv + gather + cls ---
def _gcn_fused_kernel(stats_ref, x_ref, a_ref, hop_ref,
                      w1s_ref, w1a_ref, b1_ref,
                      w2s_ref, w2a_ref, b2_ref,
                      w3s_ref, w3a_ref, b3_ref,
                      w4s_ref, w4a_ref, b4_ref,
                      cw1_ref, cb1_ref, calpha_ref, cw2_ref, cb2_ref,
                      o_ref):
    tb, n, d = x_ref.shape
    k1 = hop_ref.shape[1]

    # BatchNorm1d (train-mode batch stats, affine=False), applied in-flight.
    mean = stats_ref[0:1, :]                       # (1, D)
    inv_std = stats_ref[1:2, :]                    # (1, D)
    h = (x_ref[...].reshape(tb * n, d) - mean) * inv_std          # (TB*N, D) f32

    a = a_ref[...]                                 # (TB, N, N) bf16, read once

    # GraphConv: ReLU(cat([h, A@h]) @ W + b) == ReLU(h @ W_self + (A@h) @ W_agg + b)
    # For Dout < Din we reassociate:  (A @ h) @ W_agg == A @ (h @ W_agg),
    # contracting the N^2 matmul against the smaller feature dim.
    def graph_conv(h2d, w_self_ref, w_agg_ref, bias_ref):
        din, dout = w_self_ref.shape
        h_bf = h2d.astype(jnp.bfloat16)                            # (TB*N, Din)
        out = jnp.dot(h_bf, w_self_ref[...],
                      preferred_element_type=jnp.float32)          # (TB*N, Dout)
        if dout < din:
            hw = jnp.dot(h_bf, w_agg_ref[...],
                         preferred_element_type=jnp.float32)       # (TB*N, Dout)
            hw3 = hw.astype(jnp.bfloat16).reshape(tb, n, dout)
            agg = jnp.einsum('bij,bjd->bid', a, hw3,
                             preferred_element_type=jnp.float32)   # (TB, N, Dout)
            out = out + agg.reshape(tb * n, dout)
        else:
            h3 = h_bf.reshape(tb, n, din)
            agg = jnp.einsum('bij,bjd->bid', a, h3,
                             preferred_element_type=jnp.float32)   # (TB, N, Din)
            agg_bf = agg.astype(jnp.bfloat16).reshape(tb * n, din)
            out = out + jnp.dot(agg_bf, w_agg_ref[...],
                                preferred_element_type=jnp.float32)
        return jnp.maximum(out + bias_ref[...], 0.0)

    h = graph_conv(h, w1s_ref, w1a_ref, b1_ref)    # (TB*N, 512)
    h = graph_conv(h, w2s_ref, w2a_ref, b2_ref)    # (TB*N, 256)
    h = graph_conv(h, w3s_ref, w3a_ref, b3_ref)    # (TB*N, 128)
    h = graph_conv(h, w4s_ref, w4a_ref, b4_ref)    # (TB*N, 64)
    dlast = h.shape[1]

    # edge[b, k, :] = h[b, one_hop[b, k], :] via one-hot matmul (MXU gather,
    # bf16 exact for {0, 1}).
    hop = hop_ref[...]                                             # (TB, K1, 1)
    col_ids = jax.lax.broadcasted_iota(jnp.int32, (tb, k1, n), 2)
    onehot = (col_ids == hop).astype(jnp.bfloat16)                 # (TB, K1, N)
    h3_bf = h.astype(jnp.bfloat16).reshape(tb, n, dlast)
    edge = jnp.einsum('bkn,bnd->bkd', onehot, h3_bf,
                      preferred_element_type=jnp.float32)          # (TB, K1, 64)

    # classifier: Linear -> PReLU -> Linear, stacked across TB*K1 rows.
    e2 = edge.reshape(tb * k1, dlast).astype(jnp.bfloat16)
    z = jnp.dot(e2, cw1_ref[...], preferred_element_type=jnp.float32) + cb1_ref[...]
    z = jnp.where(z > 0, z, calpha_ref[...] * z)
    z = jnp.dot(z.astype(jnp.bfloat16), cw2_ref[...],
                preferred_element_type=jnp.float32) + cb2_ref[...]
    o_ref[...] = z.reshape(tb, k1, 2)


def _pick_tb(B, N, D):
    # Batch several graphs per grid step: fills the MXU M dimension (N=16 alone
    # is 16/256 rows on v6e/v7x) and amortises per-step overhead, while keeping
    # the double-buffered working set comfortably under v7x's 64 MiB VMEM.
    per_graph = N * N * 2 + N * D * 4 + N * 512 * 4   # bf16 A + f32 x + widest act
    budget = 24 * 1024 * 1024
    cap = max(1, budget // (2 * per_graph))           # x2 for input double-buffering
    tb = 1
    for cand in range(1, min(B, 8) + 1):
        if B % cand == 0 and cand <= cap:
            tb = cand
    # Note: on v7x, an even grid length (B // tb) keeps both TensorCores busy.
    return tb


def gcn_forward(params, x, A, one_hop, *, tb=None):
    B, N, D = x.shape
    K1 = one_hop.shape[-1]
    OUT = params["cls_w1"].shape[1]

    if tb is None:
        tb = _pick_tb(B, N, D)
    assert B % tb == 0

    # (1) BN batch statistics (tiled, pipelined; X read once).
    stats = bn_stats(x.reshape(B * N, D))                    # (2, D)

    # (2) A in bf16 (dominant HBM stream), concat-weights split + pre-cast bf16.
    A_bf = A.astype(jnp.bfloat16)

    dims = [(D, 512), (512, 256), (256, 128), (128, 64)]
    weight_args, weight_specs = [], []
    for i, (din, dout) in enumerate(dims, start=1):
        w_bf = params[f"conv{i}_w"].astype(jnp.bfloat16)
        weight_args += [w_bf[:din], w_bf[din:], params[f"conv{i}_b"].reshape(1, dout)]
        weight_specs += [
            pl.BlockSpec((din, dout), lambda b: (0, 0)),
            pl.BlockSpec((din, dout), lambda b: (0, 0)),
            pl.BlockSpec((1, dout), lambda b: (0, 0)),
        ]

    cls_args = [
        params["cls_w1"].astype(jnp.bfloat16), params["cls_b1"].reshape(1, OUT),
        params["cls_alpha"].reshape(1, OUT),
        params["cls_w2"].astype(jnp.bfloat16), params["cls_b2"].reshape(1, 2),
    ]
    cls_specs = [
        pl.BlockSpec((64, OUT), lambda b: (0, 0)),
        pl.BlockSpec((1, OUT), lambda b: (0, 0)),
        pl.BlockSpec((1, OUT), lambda b: (0, 0)),
        pl.BlockSpec((OUT, 2), lambda b: (0, 0)),
        pl.BlockSpec((1, 2), lambda b: (0, 0)),
    ]

    hop3 = one_hop.astype(jnp.int32).reshape(B, K1, 1)

    # (3) fused kernel, TB graphs per grid step.
    pred = pl.pallas_call(
        _gcn_fused_kernel,
        out_shape=jax.ShapeDtypeStruct((B, K1, 2), jnp.float32),
        grid_spec=pltpu.PrefetchScalarGridSpec(
            num_scalar_prefetch=0,
            grid=(B // tb,),
            in_specs=[
                pl.BlockSpec((2, D), lambda b: (0, 0)),          # BN stats (resident)
                pl.BlockSpec((tb, N, D), lambda b: (b, 0, 0)),   # node features
                pl.BlockSpec((tb, N, N), lambda b: (b, 0, 0)),   # adjacency (bf16, once)
                pl.BlockSpec((tb, K1, 1), lambda b: (b, 0, 0)),  # one_hop indices
            ] + weight_specs + cls_specs,
            out_specs=pl.BlockSpec((tb, K1, 2), lambda b: (b, 0, 0)),
        ),
        compiler_params=pltpu.CompilerParams(
            dimension_semantics=("parallel",),
            vmem_limit_bytes=48 * 1024 * 1024,
        ),
    )(stats, x, A_bf, hop3, *weight_args, *cls_args)

    return pred.reshape(B * K1, 2)


# ----------------------- parameter construction ------------------------------
def xavier_uniform(key, shape):
    fan_in, fan_out = shape
    bound = jnp.sqrt(6.0 / (fan_in + fan_out))
    return jax.random.uniform(key, shape, jnp.float32, -bound, bound)


def init_gcn_params(key, input_dim, output_dim):
    ks = jax.random.split(key, 8)
    params = {}
    dims = [(input_dim, 512), (512, 256), (256, 128), (128, 64)]
    for i, (din, dout) in enumerate(dims, start=1):
        params[f"conv{i}_w"] = xavier_uniform(ks[i - 1], (din * 2, dout))
        params[f"conv{i}_b"] = jnp.zeros((dout,), jnp.float32)
    # classifier: Linear(64, output) -> PReLU(output) -> Linear(output, 2)
    params["cls_w1"] = xavier_uniform(ks[4], (64, output_dim))
    params["cls_b1"] = jnp.zeros((output_dim,), jnp.float32)
    params["cls_alpha"] = jnp.full((output_dim,), 0.25, jnp.float32)   # PReLU default
    params["cls_w2"] = xavier_uniform(ks[5], (output_dim, 2))
    params["cls_b2"] = jnp.zeros((2,), jnp.float32)
    return params


# ----------------------- demo ------------------------------------------------
if __name__ == "__main__":
    B, N, D_in, K1, OUT = 2, 16, 32, 8, 16
    key = jax.random.PRNGKey(0)
    k_x, k_a, k_hop, k_p = jax.random.split(key, 4)

    x = jax.random.normal(k_x, (B, N, D_in), jnp.float32)
    # non-negative, row-normalized adjacency (example data for the mean aggregation)
    A_raw = jax.random.uniform(k_a, (B, N, N), jnp.float32)
    A = A_raw / jnp.sum(A_raw, axis=-1, keepdims=True)
    one_hop = jax.random.randint(k_hop, (B, K1), 0, N)

    params = init_gcn_params(k_p, D_in, OUT)

    gcn_forward_jit = jax.jit(gcn_forward)
    pred = gcn_forward_jit(params, x, A, one_hop)
    jax.block_until_ready(pred)

    assert pred.shape == (B * K1, 2)
    assert bool(jnp.all(jnp.isfinite(pred)))
    print("KERNEL_OK")
</pallas_src>

<mosaic_0001>
module attributes {stable_mosaic.version = 11 : i64} {
  func.func @kernel(%arg0: i32, %arg1: memref<32x32xf32, #tpu.memory_space<vmem>>, %arg2: memref<2x32xf32, #tpu.memory_space<vmem>>, %arg3: memref<2x32xf32, #tpu.memory_space<vmem>>) attributes {dimension_semantics = [#tpu.dimension_semantics<arbitrary>], iteration_bounds = array<i64: 1>, scalar_prefetch = 0 : i64, scratch_operands = 1 : i64, tpu.core_type = #tpu.core_type<tc>, window_params = [{transform_indices = @transform_0, window_bounds = array<i64: 32, 32>}, {pipeline_mode = #tpu.pipeline_mode<synchronous>, transform_indices = @transform_1, window_bounds = array<i64: 2, 32>}]} {
    %c0_i32 = arith.constant 0 : i32
    %0 = arith.cmpi eq, %arg0, %c0_i32 : i32
    %1 = arith.extui %0 : i1 to i32
    %c0_i32_0 = arith.constant 0 : i32
    %2 = arith.cmpi ne, %1, %c0_i32_0 : i32
    scf.if %2 {
      %cst_9 = arith.constant 0.000000e+00 : f32
      %16 = vector.broadcast %cst_9 : f32 to vector<2x32xf32>
      %c0_10 = arith.constant 0 : index
      %c0_11 = arith.constant 0 : index
      %17 = vector.load %arg3[%c0_10, %c0_11] : memref<2x32xf32, #tpu.memory_space<vmem>>, vector<2x32xf32>
      tpu.vector_store %arg3[%c0_10, %c0_11], %16 {strides = array<i32>} : memref<2x32xf32, #tpu.memory_space<vmem>>, vector<2x32xf32>,
    } else {
    }
    %c0 = arith.constant 0 : index
    %c0_1 = arith.constant 0 : index
    %3 = vector.load %arg1[%c0, %c0_1] : memref<32x32xf32, #tpu.memory_space<vmem>>, vector<32x32xf32>
    %c0_2 = arith.constant 0 : index
    %c0_3 = arith.constant 0 : index
    %4 = vector.load %arg3[%c0_2, %c0_3] : memref<2x32xf32, #tpu.memory_space<vmem>>, vector<2x32xf32>
    %cst = arith.constant dense<0.000000e+00> : vector<32xf32>
    %5 = vector.multi_reduction <add>, %3, %cst [0] : vector<32x32xf32> to vector<32xf32>
    %6 = vector.shape_cast %5 : vector<32xf32> to vector<1x32xf32>
    %7 = arith.mulf %3, %3 : vector<32x32xf32>
    %cst_4 = arith.constant dense<0.000000e+00> : vector<32xf32>
    %8 = vector.multi_reduction <add>, %7, %cst_4 [0] : vector<32x32xf32> to vector<32xf32>
    %9 = vector.shape_cast %8 : vector<32xf32> to vector<1x32xf32>
    %10 = tpu.concatenate %6, %9 in 0 : vector<1x32xf32>, vector<1x32xf32> -> vector<2x32xf32>
    %11 = arith.addf %4, %10 : vector<2x32xf32>
    %c0_5 = arith.constant 0 : index
    %c0_6 = arith.constant 0 : index
    %12 = vector.load %arg3[%c0_5, %c0_6] : memref<2x32xf32, #tpu.memory_space<vmem>>, vector<2x32xf32>
    tpu.vector_store %arg3[%c0_5, %c0_6], %11 {strides = array<i32>} : memref<2x32xf32, #tpu.memory_space<vmem>>, vector<2x32xf32>,
    %c0_i32_7 = arith.constant 0 : i32
    %13 = arith.cmpi eq, %arg0, %c0_i32_7 : i32
    %14 = arith.extui %13 : i1 to i32
    %c0_i32_8 = arith.constant 0 : i32
    %15 = arith.cmpi ne, %14, %c0_i32_8 : i32
    scf.if %15 {
      %c0_9 = arith.constant 0 : index
      %c0_10 = arith.constant 0 : index
      %16 = vector.load %arg3[%c0_9, %c0_10] : memref<2x32xf32, #tpu.memory_space<vmem>>, vector<1x32xf32>
      %cst_11 = arith.constant 3.125000e-02 : f32
      %17 = vector.broadcast %cst_11 : f32 to vector<1x32xf32>
      %18 = arith.mulf %16, %17 : vector<1x32xf32>
      %c1 = arith.constant 1 : index
      %c0_12 = arith.constant 0 : index
      %19 = vector.load %arg3[%c1, %c0_12] : memref<2x32xf32, #tpu.memory_space<vmem>>, vector<1x32xf32>
      %cst_13 = arith.constant 3.125000e-02 : f32
      %20 = vector.broadcast %cst_13 : f32 to vector<1x32xf32>
      %21 = arith.mulf %19, %20 : vector<1x32xf32>
      %22 = arith.mulf %18, %18 : vector<1x32xf32>
      %23 = arith.subf %21, %22 : vector<1x32xf32>
      %cst_14 = arith.constant 9.99999974E-6 : f32
      %24 = vector.broadcast %cst_14 : f32 to vector<1x32xf32>
      %25 = arith.addf %23, %24 : vector<1x32xf32>
      %26 = math.rsqrt %25 : vector<1x32xf32>
      %27 = tpu.concatenate %18, %26 in 0 : vector<1x32xf32>, vector<1x32xf32> -> vector<2x32xf32>
      %c0_15 = arith.constant 0 : index
      %c0_16 = arith.constant 0 : index
      %28 = vector.load %arg2[%c0_15, %c0_16] : memref<2x32xf32, #tpu.memory_space<vmem>>, vector<2x32xf32>
      tpu.vector_store %arg2[%c0_15, %c0_16], %27 {strides = array<i32>} : memref<2x32xf32, #tpu.memory_space<vmem>>, vector<2x32xf32>,
    } else {
    }
    return
  }
  func.func @transform_0(%arg0: i32) -> (i32, i32) {
    %c0_i32 = arith.constant 0 : i32
    %c0_i32_0 = arith.constant 0 : i32
    return %arg0, %c0_i32 : i32, i32
  }
  func.func @transform_1(%arg0: i32) -> (i32, i32) {
    %c0_i32 = arith.constant 0 : i32
    %c0_i32_0 = arith.constant 0 : i32
    %c0_i32_1 = arith.constant 0 : i32
    return %c0_i32, %c0_i32_0 : i32, i32
  }
}

module attributes {stable_mosaic.version = 11 : i64} {
  func.func @_gcn_fused_kernel(%arg0: i32, %arg1: memref<2x32xf32, #tpu.memory_space<vmem>>, %arg2: memref<2x16x32xf32, #tpu.memory_space<vmem>>, %arg3: memref<2x16x16xbf16, #tpu.memory_space<vmem>>, %arg4: memref<2x8x1xi32, #tpu.memory_space<vmem>>, %arg5: memref<32x512xbf16, #tpu.memory_space<vmem>>, %arg6: memref<32x512xbf16, #tpu.memory_space<vmem>>, %arg7: memref<1x512xf32, #tpu.memory_space<vmem>>, %arg8: memref<512x256xbf16, #tpu.memory_space<vmem>>, %arg9: memref<512x256xbf16, #tpu.memory_space<vmem>>, %arg10: memref<1x256xf32, #tpu.memory_space<vmem>>, %arg11: memref<256x128xbf16, #tpu.memory_space<vmem>>, %arg12: memref<256x128xbf16, #tpu.memory_space<vmem>>, %arg13: memref<1x128xf32, #tpu.memory_space<vmem>>, %arg14: memref<128x64xbf16, #tpu.memory_space<vmem>>, %arg15: memref<128x64xbf16, #tpu.memory_space<vmem>>, %arg16: memref<1x64xf32, #tpu.memory_space<vmem>>, %arg17: memref<64x16xbf16, #tpu.memory_space<vmem>>, %arg18: memref<1x16xf32, #tpu.memory_space<vmem>>, %arg19: memref<1x16xf32, #tpu.memory_space<vmem>>, %arg20: memref<16x2xbf16, #tpu.memory_space<vmem>>, %arg21: memref<1x2xf32, #tpu.memory_space<vmem>>, %arg22: memref<2x8x2xf32, #tpu.memory_space<vmem>>) attributes {dimension_semantics = [#tpu.dimension_semantics<parallel>], iteration_bounds = array<i64: 1>, scalar_prefetch = 0 : i64, scratch_operands = 0 : i64, tpu.core_type = #tpu.core_type<tc>, window_params = [{pipeline_mode = #tpu.pipeline_mode<synchronous>, transform_indices = @transform_0, window_bounds = array<i64: 2, 32>}, {transform_indices = @transform_1, window_bounds = array<i64: 2, 16, 32>}, {transform_indices = @transform_2, window_bounds = array<i64: 2, 16, 16>}, {transform_indices = @transform_3, window_bounds = array<i64: 2, 8, 1>}, {pipeline_mode = #tpu.pipeline_mode<synchronous>, transform_indices = @transform_4, window_bounds = array<i64: 32, 512>}, {pipeline_mode = #tpu.pipeline_mode<synchronous>, transform_indices = @transform_5, window_bounds = array<i64: 32, 512>}, {pipeline_mode = #tpu.pipeline_mode<synchronous>, transform_indices = @transform_6, window_bounds = array<i64: 1, 512>}, {pipeline_mode = #tpu.pipeline_mode<synchronous>, transform_indices = @transform_7, window_bounds = array<i64: 512, 256>}, {pipeline_mode = #tpu.pipeline_mode<synchronous>, transform_indices = @transform_8, window_bounds = array<i64: 512, 256>}, {pipeline_mode = #tpu.pipeline_mode<synchronous>, transform_indices = @transform_9, window_bounds = array<i64: 1, 256>}, {pipeline_mode = #tpu.pipeline_mode<synchronous>, transform_indices = @transform_10, window_bounds = array<i64: 256, 128>}, {pipeline_mode = #tpu.pipeline_mode<synchronous>, transform_indices = @transform_11, window_bounds = array<i64: 256, 128>}, {pipeline_mode = #tpu.pipeline_mode<synchronous>, transform_indices = @transform_12, window_bounds = array<i64: 1, 128>}, {pipeline_mode = #tpu.pipeline_mode<synchronous>, transform_indices = @transform_13, window_bounds = array<i64: 128, 64>}, {pipeline_mode = #tpu.pipeline_mode<synchronous>, transform_indices = @transform_14, window_bounds = array<i64: 128, 64>}, {pipeline_mode = #tpu.pipeline_mode<synchronous>, transform_indices = @transform_15, window_bounds = array<i64: 1, 64>}, {pipeline_mode = #tpu.pipeline_mode<synchronous>, transform_indices = @transform_16, window_bounds = array<i64: 64, 16>}, {pipeline_mode = #tpu.pipeline_mode<synchronous>, transform_indices = @transform_17, window_bounds = array<i64: 1, 16>}, {pipeline_mode = #tpu.pipeline_mode<synchronous>, transform_indices = @transform_18, window_bounds = array<i64: 1, 16>}, {pipeline_mode = #tpu.pipeline_mode<synchronous>, transform_indices = @transform_19, window_bounds = array<i64: 16, 2>}, {pipeline_mode = #tpu.pipeline_mode<synchronous>, transform_indices = @transform_20, window_bounds = array<i64: 1, 2>}, {transform_indices = @transform_21, window_bounds = array<i64: 2, 8, 2>}]} {
    %c0 = arith.constant 0 : index
    %c0_0 = arith.constant 0 : index
    %0 = vector.load %arg1[%c0, %c0_0] : memref<2x32xf32, #tpu.memory_space<vmem>>, vector<1x32xf32>
    %c1 = arith.constant 1 : index
    %c0_1 = arith.constant 0 : index
    %1 = vector.load %arg1[%c1, %c0_1] : memref<2x32xf32, #tpu.memory_space<vmem>>, vector<1x32xf32>
    %c0_2 = arith.constant 0 : index
    %c0_3 = arith.constant 0 : index
    %c0_4 = arith.constant 0 : index
    %2 = vector.load %arg2[%c0_2, %c0_3, %c0_4] : memref<2x16x32xf32, #tpu.memory_space<vmem>>, vector<2x16x32xf32>
    %3 = vector.shape_cast %2 : vector<2x16x32xf32> to vector<32x32xf32>
    %4 = vector.broadcast %0 : vector<1x32xf32> to vector<32x32xf32>
    %5 = arith.subf %3, %4 : vector<32x32xf32>
    %6 = vector.broadcast %1 : vector<1x32xf32> to vector<32x32xf32>
    %7 = arith.mulf %5, %6 : vector<32x32xf32>
    %c0_5 = arith.constant 0 : index
    %c0_6 = arith.constant 0 : index
    %c0_7 = arith.constant 0 : index
    %8 = vector.load %arg3[%c0_5, %c0_6, %c0_7] : memref<2x16x16xbf16, #tpu.memory_space<vmem>>, vector<2x16x16xbf16>
    %9 = arith.truncf %7 : vector<32x32xf32> to vector<32x32xbf16>
    %c0_8 = arith.constant 0 : index
    %c0_9 = arith.constant 0 : index
    %10 = vector.load %arg5[%c0_8, %c0_9] : memref<32x512xbf16, #tpu.memory_space<vmem>>, vector<32x512xbf16>
    %cst = arith.constant dense<0.000000e+00> : vector<32x512xf32>
    %11 = tpu.matmul %9, %10, %cst {dimension_numbers = #tpu.dot_dimension_numbers<[1], [0], [0], [1], [0, 0, 1, 1], [], []>} : vector<32x32xbf16>, vector<32x512xbf16>, vector<32x512xf32> -> vector<32x512xf32>
    %12 = vector.shape_cast %9 : vector<32x32xbf16> to vector<2x16x32xbf16>
    "tpu.trace_start"() <{level = 10 : i32, message = "bij,bjd->bid"}> : () -> ()
    %cst_10 = arith.constant dense<0.000000e+00> : vector<2x16x32xf32>
    %13 = tpu.matmul %8, %12, %cst_10 {dimension_numbers = #tpu.dot_dimension_numbers<[2], [1], [1], [2], [0, 0, 0, 1, 1, 2], [0], [0]>} : vector<2x16x16xbf16>, vector<2x16x32xbf16>, vector<2x16x32xf32> -> vector<2x16x32xf32>
    "tpu.trace_stop"() : () -> ()
    %14 = arith.truncf %13 : vector<2x16x32xf32> to vector<2x16x32xbf16>
    %15 = vector.shape_cast %14 : vector<2x16x32xbf16> to vector<32x32xbf16>
    %c0_11 = arith.constant 0 : index
    %c0_12 = arith.constant 0 : index
    %16 = vector.load %arg6[%c0_11, %c0_12] : memref<32x512xbf16, #tpu.memory_space<vmem>>, vector<32x512xbf16>
    %cst_13 = arith.constant dense<0.000000e+00> : vector<32x512xf32>
    %17 = tpu.matmul %15, %16, %cst_13 {dimension_numbers = #tpu.dot_dimension_numbers<[1], [0], [0], [1], [0, 0, 1, 1], [], []>} : vector<32x32xbf16>, vector<32x512xbf16>, vector<32x512xf32> -> vector<32x512xf32>
    %18 = arith.addf %11, %17 : vector<32x512xf32>
    %c0_14 = arith.constant 0 : index
    %c0_15 = arith.constant 0 : index
    %19 = vector.load %arg7[%c0_14, %c0_15] : memref<1x512xf32, #tpu.memory_space<vmem>>, vector<1x512xf32>
    %20 = vector.broadcast %19 : vector<1x512xf32> to vector<32x512xf32>
    %21 = arith.addf %18, %20 : vector<32x512xf32>
    %cst_16 = arith.constant 0.000000e+00 : f32
    %22 = vector.broadcast %cst_16 : f32 to vector<32x512xf32>
    %23 = arith.maximumf %21, %22 : vector<32x512xf32>
    %24 = arith.truncf %23 : vector<32x512xf32> to vector<32x512xbf16>
    %c0_17 = arith.constant 0 : index
    %c0_18 = arith.constant 0 : index
    %25 = vector.load %arg8[%c0_17, %c0_18] : memref<512x256xbf16, #tpu.memory_space<vmem>>, vector<512x256xbf16>
    %cst_19 = arith.constant dense<0.000000e+00> : vector<32x256xf32>
    %26 = tpu.matmul %24, %25, %cst_19 {dimension_numbers = #tpu.dot_dimension_numbers<[1], [0], [0], [1], [0, 0, 1, 1], [], []>} : vector<32x512xbf16>, vector<512x256xbf16>, vector<32x256xf32> -> vector<32x256xf32>
    %c0_20 = arith.constant 0 : index
    %c0_21 = arith.constant 0 : index
    %27 = vector.load %arg9[%c0_20, %c0_21] : memref<512x256xbf16, #tpu.memory_space<vmem>>, vector<512x256xbf16>
    %cst_22 = arith.constant dense<0.000000e+00> : vector<32x256xf32>
    %28 = tpu.matmul %24, %27, %cst_22 {dimension_numbers = #tpu.dot_dimension_numbers<[1], [0], [0], [1], [0, 0, 1, 1], [], []>} : vector<32x512xbf16>, vector<512x256xbf16>, vector<32x256xf32> -> vector<32x256xf32>
    %29 = arith.truncf %28 : vector<32x256xf32> to vector<32x256xbf16>
    %30 = vector.shape_cast %29 : vector<32x256xbf16> to vector<2x16x256xbf16>
    "tpu.trace_start"() <{level = 10 : i32, message = "bij,bjd->bid"}> : () -> ()
    %cst_23 = arith.constant dense<0.000000e+00> : vector<2x16x256xf32>
    %31 = tpu.matmul %8, %30, %cst_23 {dimension_numbers = #tpu.dot_dimension_numbers<[2], [1], [1], [2], [0, 0, 0, 1, 1, 2], [0], [0]>} : vector<2x16x16xbf16>, vector<2x16x256xbf16>, vector<2x16x256xf32> -> vector<2x16x256xf32>
    "tpu.trace_stop"() : () -> ()
    %32 = vector.shape_cast %31 : vector<2x16x256xf32> to vector<32x256xf32>
    %33 = arith.addf %26, %32 : vector<32x256xf32>
    %c0_24 = arith.constant 0 : index
    %c0_25 = arith.constant 0 : index
    %34 = vector.load %arg10[%c0_24, %c0_25] : memref<1x256xf32, #tpu.memory_space<vmem>>, vector<1x256xf32>
    %35 = vector.broadcast %34 : vector<1x256xf32> to vector<32x256xf32>
    %36 = arith.addf %33, %35 : vector<32x256xf32>
    %cst_26 = arith.constant 0.000000e+00 : f32
    %37 = vector.broadcast %cst_26 : f32 to vector<32x256xf32>
    %38 = arith.maximumf %36, %37 : vector<32x256xf32>
    %39 = arith.truncf %38 : vector<32x256xf32> to vector<32x256xbf16>
    %c0_27 = arith.constant 0 : index
    %c0_28 = arith.constant 0 : index
    %40 = vector.load %arg11[%c0_27, %c0_28] : memref<256x128xbf16, #tpu.memory_space<vmem>>, vector<256x128xbf16>
    %cst_29 = arith.constant dense<0.000000e+00> : vector<32x128xf32>
    %41 = tpu.matmul %39, %40, %cst_29 {dimension_numbers = #tpu.dot_dimension_numbers<[1], [0], [0], [1], [0, 0, 1, 1], [], []>} : vector<32x256xbf16>, vector<256x128xbf16>, vector<32x128xf32> -> vector<32x128xf32>
    %c0_30 = arith.constant 0 : index
    %c0_31 = arith.constant 0 : index
    %42 = vector.load %arg12[%c0_30, %c0_31] : memref<256x128xbf16, #tpu.memory_space<vmem>>, vector<256x128xbf16>
    %cst_32 = arith.constant dense<0.000000e+00> : vector<32x128xf32>
    %43 = tpu.matmul %39, %42, %cst_32 {dimension_numbers = #tpu.dot_dimension_numbers<[1], [0], [0], [1], [0, 0, 1, 1], [], []>} : vector<32x256xbf16>, vector<256x128xbf16>, vector<32x128xf32> -> vector<32x128xf32>
    %44 = arith.truncf %43 : vector<32x128xf32> to vector<32x128xbf16>
    %45 = vector.shape_cast %44 : vector<32x128xbf16> to vector<2x16x128xbf16>
    "tpu.trace_start"() <{level = 10 : i32, message = "bij,bjd->bid"}> : () -> ()
    %cst_33 = arith.constant dense<0.000000e+00> : vector<2x16x128xf32>
    %46 = tpu.matmul %8, %45, %cst_33 {dimension_numbers = #tpu.dot_dimension_numbers<[2], [1], [1], [2], [0, 0, 0, 1, 1, 2], [0], [0]>} : vector<2x16x16xbf16>, vector<2x16x128xbf16>, vector<2x16x128xf32> -> vector<2x16x128xf32>
    "tpu.trace_stop"() : () -> ()
    %47 = vector.shape_cast %46 : vector<2x16x128xf32> to vector<32x128xf32>
    %48 = arith.addf %41, %47 : vector<32x128xf32>
    %c0_34 = arith.constant 0 : index
    %c0_35 = arith.constant 0 : index
    %49 = vector.load %arg13[%c0_34, %c0_35] : memref<1x128xf32, #tpu.memory_space<vmem>>, vector<1x128xf32>
    %50 = vector.broadcast %49 : vector<1x128xf32> to vector<32x128xf32>
    %51 = arith.addf %48, %50 : vector<32x128xf32>
    %cst_36 = arith.constant 0.000000e+00 : f32
    %52 = vector.broadcast %cst_36 : f32 to vector<32x128xf32>
    %53 = arith.maximumf %51, %52 : vector<32x128xf32>
    %54 = arith.truncf %53 : vector<32x128xf32> to vector<32x128xbf16>
    %c0_37 = arith.constant 0 : index
    %c0_38 = arith.constant 0 : index
    %55 = vector.load %arg14[%c0_37, %c0_38] : memref<128x64xbf16, #tpu.memory_space<vmem>>, vector<128x64xbf16>
    %cst_39 = arith.constant dense<0.000000e+00> : vector<32x64xf32>
    %56 = tpu.matmul %54, %55, %cst_39 {dimension_numbers = #tpu.dot_dimension_numbers<[1], [0], [0], [1], [0, 0, 1, 1], [], []>} : vector<32x128xbf16>, vector<128x64xbf16>, vector<32x64xf32> -> vector<32x64xf32>
    %c0_40 = arith.constant 0 : index
    %c0_41 = arith.constant 0 : index
    %57 = vector.load %arg15[%c0_40, %c0_41] : memref<128x64xbf16, #tpu.memory_space<vmem>>, vector<128x64xbf16>
    %cst_42 = arith.constant dense<0.000000e+00> : vector<32x64xf32>
    %58 = tpu.matmul %54, %57, %cst_42 {dimension_numbers = #tpu.dot_dimension_numbers<[1], [0], [0], [1], [0, 0, 1, 1], [], []>} : vector<32x128xbf16>, vector<128x64xbf16>, vector<32x64xf32> -> vector<32x64xf32>
    %59 = arith.truncf %58 : vector<32x64xf32> to vector<32x64xbf16>
    %60 = vector.shape_cast %59 : vector<32x64xbf16> to vector<2x16x64xbf16>
    "tpu.trace_start"() <{level = 10 : i32, message = "bij,bjd->bid"}> : () -> ()
    %cst_43 = arith.constant dense<0.000000e+00> : vector<2x16x64xf32>
    %61 = tpu.matmul %8, %60, %cst_43 {dimension_numbers = #tpu.dot_dimension_numbers<[2], [1], [1], [2], [0, 0, 0, 1, 1, 2], [0], [0]>} : vector<2x16x16xbf16>, vector<2x16x64xbf16>, vector<2x16x64xf32> -> vector<2x16x64xf32>
    "tpu.trace_stop"() : () -> ()
    %62 = vector.shape_cast %61 : vector<2x16x64xf32> to vector<32x64xf32>
    %63 = arith.addf %56, %62 : vector<32x64xf32>
    %c0_44 = arith.constant 0 : index
    %c0_45 = arith.constant 0 : index
    %64 = vector.load %arg16[%c0_44, %c0_45] : memref<1x64xf32, #tpu.memory_space<vmem>>, vector<1x64xf32>
    %65 = vector.broadcast %64 : vector<1x64xf32> to vector<32x64xf32>
    %66 = arith.addf %63, %65 : vector<32x64xf32>
    %cst_46 = arith.constant 0.000000e+00 : f32
    %67 = vector.broadcast %cst_46 : f32 to vector<32x64xf32>
    %68 = arith.maximumf %66, %67 : vector<32x64xf32>
    %c0_47 = arith.constant 0 : index
    %c0_48 = arith.constant 0 : index
    %c0_49 = arith.constant 0 : index
    %69 = vector.load %arg4[%c0_47, %c0_48, %c0_49] : memref<2x8x1xi32, #tpu.memory_space<vmem>>, vector<2x8x1xi32>
    %70 = tpu.iota {dimensions = array<i32: 2>} : vector<2x8x16xi32>
    %71 = vector.broadcast %69 : vector<2x8x1xi32> to vector<2x8x16xi32>
    %72 = arith.cmpi eq, %70, %71 : vector<2x8x16xi32>
    %73 = arith.extui %72 : vector<2x8x16xi1> to vector<2x8x16xi32>
    %74 = arith.sitofp %73 : vector<2x8x16xi32> to vector<2x8x16xf32>
    %75 = arith.truncf %74 : vector<2x8x16xf32> to vector<2x8x16xbf16>
    %76 = arith.truncf %68 : vector<32x64xf32> to vector<32x64xbf16>
    %77 = vector.shape_cast %76 : vector<32x64xbf16> to vector<2x16x64xbf16>
    "tpu.trace_start"() <{level = 10 : i32, message = "bkn,bnd->bkd"}> : () -> ()
    %cst_50 = arith.constant dense<0.000000e+00> : vector<2x8x64xf32>
    %78 = tpu.matmul %75, %77, %cst_50 {dimension_numbers = #tpu.dot_dimension_numbers<[2], [1], [1], [2], [0, 0, 0, 1, 1, 2], [0], [0]>} : vector<2x8x16xbf16>, vector<2x16x64xbf16>, vector<2x8x64xf32> -> vector<2x8x64xf32>
    "tpu.trace_stop"() : () -> ()
    %79 = vector.shape_cast %78 : vector<2x8x64xf32> to vector<16x64xf32>
    %80 = arith.truncf %79 : vector<16x64xf32> to vector<16x64xbf16>
    %c0_51 = arith.constant 0 : index
    %c0_52 = arith.constant 0 : index
    %81 = vector.load %arg17[%c0_51, %c0_52] : memref<64x16xbf16, #tpu.memory_space<vmem>>, vector<64x16xbf16>
    %cst_53 = arith.constant dense<0.000000e+00> : vector<16x16xf32>
    %82 = tpu.matmul %80, %81, %cst_53 {dimension_numbers = #tpu.dot_dimension_numbers<[1], [0], [0], [1], [0, 0, 1, 1], [], []>} : vector<16x64xbf16>, vector<64x16xbf16>, vector<16x16xf32> -> vector<16x16xf32>
    %c0_54 = arith.constant 0 : index
    %c0_55 = arith.constant 0 : index
    %83 = vector.load %arg18[%c0_54, %c0_55] : memref<1x16xf32, #tpu.memory_space<vmem>>, vector<1x16xf32>
    %84 = vector.broadcast %83 : vector<1x16xf32> to vector<16x16xf32>
    %85 = arith.addf %82, %84 : vector<16x16xf32>
    %cst_56 = arith.constant 0.000000e+00 : f32
    %86 = vector.broadcast %cst_56 : f32 to vector<16x16xf32>
    %87 = arith.cmpf ogt, %85, %86 : vector<16x16xf32>
    %c0_57 = arith.constant 0 : index
    %c0_58 = arith.constant 0 : index
    %88 = vector.load %arg19[%c0_57, %c0_58] : memref<1x16xf32, #tpu.memory_space<vmem>>, vector<1x16xf32>
    %89 = vector.broadcast %88 : vector<1x16xf32> to vector<16x16xf32>
    %90 = arith.mulf %89, %85 : vector<16x16xf32>
    %91 = arith.select %87, %85, %90 : vector<16x16xi1>, vector<16x16xf32>
    %92 = arith.truncf %91 : vector<16x16xf32> to vector<16x16xbf16>
    %c0_59 = arith.constant 0 : index
    %c0_60 = arith.constant 0 : index
    %93 = vector.load %arg20[%c0_59, %c0_60] : memref<16x2xbf16, #tpu.memory_space<vmem>>, vector<16x2xbf16>
    %cst_61 = arith.constant dense<0.000000e+00> : vector<16x2xf32>
    %94 = tpu.matmul %92, %93, %cst_61 {dimension_numbers = #tpu.dot_dimension_numbers<[1], [0], [0], [1], [0, 0, 1, 1], [], []>} : vector<16x16xbf16>, vector<16x2xbf16>, vector<16x2xf32> -> vector<16x2xf32>
    %c0_62 = arith.constant 0 : index
    %c0_63 = arith.constant 0 : index
    %95 = vector.load %arg21[%c0_62, %c0_63] : memref<1x2xf32, #tpu.memory_space<vmem>>, vector<1x2xf32>
    %96 = vector.broadcast %95 : vector<1x2xf32> to vector<16x2xf32>
    %97 = arith.addf %94, %96 : vector<16x2xf32>
    %98 = vector.shape_cast %97 : vector<16x2xf32> to vector<2x8x2xf32>
    %c0_64 = arith.constant 0 : index
    %c0_65 = arith.constant 0 : index
    %c0_66 = arith.constant 0 : index
    %99 = vector.load %arg22[%c0_64, %c0_65, %c0_66] : memref<2x8x2xf32, #tpu.memory_space<vmem>>, vector<2x8x2xf32>
    tpu.vector_store %arg22[%c0_64, %c0_65, %c0_66], %98 {strides = array<i32>} : memref<2x8x2xf32, #tpu.memory_space<vmem>>, vector<2x8x2xf32>,
    return
  }
  func.func @transform_0(%arg0: i32) -> (i32, i32) {
    %c0_i32 = arith.constant 0 : i32
    %c0_i32_0 = arith.constant 0 : i32
    %c0_i32_1 = arith.constant 0 : i32
    return %c0_i32, %c0_i32_0 : i32, i32
  }
  func.func @transform_1(%arg0: i32) -> (i32, i32, i32) {
    %c0_i32 = arith.constant 0 : i32
    %c0_i32_0 = arith.constant 0 : i32
    %c0_i32_1 = arith.constant 0 : i32
    return %arg0, %c0_i32, %c0_i32_0 : i32, i32, i32
  }
  func.func @transform_2(%arg0: i32) -> (i32, i32, i32) {
    %c0_i32 = arith.constant 0 : i32
    %c0_i32_0 = arith.constant 0 : i32
    %c0_i32_1 = arith.constant 0 : i32
    return %arg0, %c0_i32, %c0_i32_0 : i32, i32, i32
  }
  func.func @transform_3(%arg0: i32) -> (i32, i32, i32) {
    %c0_i32 = arith.constant 0 : i32
    %c0_i32_0 = arith.constant 0 : i32
    %c0_i32_1 = arith.constant 0 : i32
    return %arg0, %c0_i32, %c0_i32_0 : i32, i32, i32
  }
  func.func @transform_4(%arg0: i32) -> (i32, i32) {
    %c0_i32 = arith.constant 0 : i32
    %c0_i32_0 = arith.constant 0 : i32
    %c0_i32_1 = arith.constant 0 : i32
    return %c0_i32, %c0_i32_0 : i32, i32
  }
  func.func @transform_5(%arg0: i32) -> (i32, i32) {
    %c0_i32 = arith.constant 0 : i32
    %c0_i32_0 = arith.constant 0 : i32
    %c0_i32_1 = arith.constant 0 : i32
    return %c0_i32, %c0_i32_0 : i32, i32
  }
  func.func @transform_6(%arg0: i32) -> (i32, i32) {
    %c0_i32 = arith.constant 0 : i32
    %c0_i32_0 = arith.constant 0 : i32
    %c0_i32_1 = arith.constant 0 : i32
    return %c0_i32, %c0_i32_0 : i32, i32
  }
  func.func @transform_7(%arg0: i32) -> (i32, i32) {
    %c0_i32 = arith.constant 0 : i32
    %c0_i32_0 = arith.constant 0 : i32
    %c0_i32_1 = arith.constant 0 : i32
    return %c0_i32, %c0_i32_0 : i32, i32
  }
  func.func @transform_8(%arg0: i32) -> (i32, i32) {
    %c0_i32 = arith.constant 0 : i32
    %c0_i32_0 = arith.constant 0 : i32
    %c0_i32_1 = arith.constant 0 : i32
    return %c0_i32, %c0_i32_0 : i32, i32
  }
  func.func @transform_9(%arg0: i32) -> (i32, i32) {
    %c0_i32 = arith.constant 0 : i32
    %c0_i32_0 = arith.constant 0 : i32
    %c0_i32_1 = arith.constant 0 : i32
    return %c0_i32, %c0_i32_0 : i32, i32
  }
  func.func @transform_10(%arg0: i32) -> (i32, i32) {
    %c0_i32 = arith.constant 0 : i32
    %c0_i32_0 = arith.constant 0 : i32
    %c0_i32_1 = arith.constant 0 : i32
    return %c0_i32, %c0_i32_0 : i32, i32
  }
  func.func @transform_11(%arg0: i32) -> (i32, i32) {
    %c0_i32 = arith.constant 0 : i32
    %c0_i32_0 = arith.constant 0 : i32
    %c0_i32_1 = arith.constant 0 : i32
    return %c0_i32, %c0_i32_0 : i32, i32
  }
  func.func @transform_12(%arg0: i32) -> (i32, i32) {
    %c0_i32 = arith.constant 0 : i32
    %c0_i32_0 = arith.constant 0 : i32
    %c0_i32_1 = arith.constant 0 : i32
    return %c0_i32, %c0_i32_0 : i32, i32
  }
  func.func @transform_13(%arg0: i32) -> (i32, i32) {
    %c0_i32 = arith.constant 0 : i32
    %c0_i32_0 = arith.constant 0 : i32
    %c0_i32_1 = arith.constant 0 : i32
    return %c0_i32, %c0_i32_0 : i32, i32
  }
  func.func @transform_14(%arg0: i32) -> (i32, i32) {
    %c0_i32 = arith.constant 0 : i32
    %c0_i32_0 = arith.constant 0 : i32
    %c0_i32_1 = arith.constant 0 : i32
    return %c0_i32, %c0_i32_0 : i32, i32
  }
  func.func @transform_15(%arg0: i32) -> (i32, i32) {
    %c0_i32 = arith.constant 0 : i32
    %c0_i32_0 = arith.constant 0 : i32
    %c0_i32_1 = arith.constant 0 : i32
    return %c0_i32, %c0_i32_0 : i32, i32
  }
  func.func @transform_16(%arg0: i32) -> (i32, i32) {
    %c0_i32 = arith.constant 0 : i32
    %c0_i32_0 = arith.constant 0 : i32
    %c0_i32_1 = arith.constant 0 : i32
    return %c0_i32, %c0_i32_0 : i32, i32
  }
  func.func @transform_17(%arg0: i32) -> (i32, i32) {
    %c0_i32 = arith.constant 0 : i32
    %c0_i32_0 = arith.constant 0 : i32
    %c0_i32_1 = arith.constant 0 : i32
    return %c0_i32, %c0_i32_0 : i32, i32
  }
  func.func @transform_18(%arg0: i32) -> (i32, i32) {
    %c0_i32 = arith.constant 0 : i32
    %c0_i32_0 = arith.constant 0 : i32
    %c0_i32_1 = arith.constant 0 : i32
    return %c0_i32, %c0_i32_0 : i32, i32
  }
  func.func @transform_19(%arg0: i32) -> (i32, i32) {
    %c0_i32 = arith.constant 0 : i32
    %c0_i32_0 = arith.constant 0 : i32
    %c0_i32_1 = arith.constant 0 : i32
    return %c0_i32, %c0_i32_0 : i32, i32
  }
  func.func @transform_20(%arg0: i32) -> (i32, i32) {
    %c0_i32 = arith.constant 0 : i32
    %c0_i32_0 = arith.constant 0 : i32
    %c0_i32_1 = arith.constant 0 : i32
    return %c0_i32, %c0_i32_0 : i32, i32
  }
  func.func @transform_21(%arg0: i32) -> (i32, i32, i32) {
    %c0_i32 = arith.constant 0 : i32
    %c0_i32_0 = arith.constant 0 : i32
    %c0_i32_1 = arith.constant 0 : i32
    return %arg0, %c0_i32, %c0_i32_0 : i32, i32, i32
  }
}

</mosaic_0001>

<bundles_post_ra>
// kernel: gcn_forward.2
= control target key start
LH: loop header
LB: loop body
LE: loop exit
PB: predicated region body
PF: predicated region fallthrough
CT: control target
= control target key end

     0   :  { %vm12_vm0 = vcmask 254976   ;;  %vm19_vm1 = vcmask 261120   ;;  %v78_v0 = vmov 0.0   ;;  %vm50_vm2 = vcmask 1040384   ;;  %s117_s0 = inlined_call_operand.vmem [shape: f32[32,32], index: 0, kind: input, shape index: {}]   ;;  %s118_s1 = inlined_call_operand.vmem [shape: f32[2,32], index: 1, kind: output, shape index: {}]  }
   0x1   :  { %13 = vst.msk [vmem:[#allocation2] sm:$0x3] %vm12_vm0, %v78_v0  ;;  %v14_v1 = vld [vmem:[%s117_s0] sm:$0xff]  ;;  %v15_v2 = vld [vmem:[%s117_s0 + $0x8] sm:$0xff]  ;;  %v16_v3 = vld [vmem:[%s117_s0 + $0x10] sm:$0xff] }
   0x2   :  { %v17_v4 = vld [vmem:[%s117_s0 + $0x18] sm:$0xff]  ;;  %v20_v5 = vsel %vm19_vm1, %v14_v1, 0.0  ;;  %v21_v6 = vsel %vm19_vm1, %v15_v2, 0.0  ;;  %v23_v7 = vsel %vm19_vm1, %v16_v3, 0.0  ;;  %v33_v8 = vmul.f32 %v14_v1, %v14_v1 }
   0x3   :  { %v22_v9 = vadd.f32 %v21_v6, %v20_v5  ;;  %v34_v10 = vmul.f32 %v15_v2, %v15_v2  ;;  %v35_v11 = vmul.f32 %v16_v3, %v16_v3  ;;  %v25_v12 = vsel %vm19_vm1, %v17_v4, 0.0 }
   0x4   :  { %v36_v13 = vmul.f32 %v17_v4, %v17_v4  ;;  %v37_v14 = vsel %vm19_vm1, %v33_v8, 0.0 }
   0x5   :  { %v24_v15 = vadd.f32 %v23_v7, %v22_v9  ;;  %v38_v16 = vsel %vm19_vm1, %v34_v10, 0.0  ;;  %v40_v17 = vsel %vm19_vm1, %v35_v11, 0.0 }
   0x6   :  { %v39_v18 = vadd.f32 %v38_v16, %v37_v14  ;;  %v42_v20 = vsel %vm19_vm1, %v36_v13, 0.0 }
   0x7   :  { %v26_v19 = vadd.f32 %v25_v12, %v24_v15 }
   0x8   :  { %v41_v21 = vadd.f32 %v40_v17, %v39_v18  ;;  %v18_v34 = vld [vmem:[#allocation2] sm:$0x3] }
   0x9   :  { %v27_v22 = vrot.slane %v26_v19, 4 }
   0xa   :  { %v43_v23 = vadd.f32 %v42_v20, %v41_v21 }
   0xb   :  { %v28_v24 = vadd.f32 %v27_v22, %v26_v19 }
   0xc   :  { %v44_v25 = vrot.slane %v43_v23, 4 }
   0xd   :  { %v29_v26 = vrot.slane %v28_v24, 2 }
   0xe   :  { %v45_v27 = vadd.f32 %v44_v25, %v43_v23 }
   0xf   :  { %v30_v28 = vadd.f32 %v29_v26, %v28_v24 }
  0x10   :  { %v46_v29 = vrot.slane %v45_v27, 2 }
  0x11   :  { %v31_v30 = vrot.slane %v30_v28, 1 }
  0x12   :  { %v47_v31 = vadd.f32 %v46_v29, %v45_v27 }
  0x13   :  { %v32_v32 = vadd.f32 %v31_v30, %v30_v28 }
  0x14   :  { %v48_v33 = vrot.slane %v47_v31, 1 }
  0x16   :  { %v49_v35 = vadd.f32 %v48_v33, %v47_v31 }
  0x18   :  { %v51_v36 = vsel %vm50_vm2, %v32_v32, %v49_v35 }
  0x19   :  { %v52_v37 = vadd.f32 %v51_v36, %v18_v34 }
  0x1b   :  { %54 = vst.msk [vmem:[#allocation2] sm:$0x3] %vm12_vm0, %v52_v37 }
  0x22   :  { %v58_v38 = vld [vmem:[#allocation2] sm:$0x1]  ;;  %v60_v39 = vld [vmem:[#allocation2 + $0x1] sm:$0x1] }
  0x23   :  { %v59_v40 = vmul.f32 0.03125, %v58_v38  ;;  %v61_v41 = vmul.f32 0.03125, %v60_v39 }
  0x25   :  { %v62_v42 = vmul.f32 %v59_v40, %v59_v40 }
  0x27   :  { %v63_v43 = vsub.f32 %v61_v41, %v62_v42 }
  0x29   :  { %v64_v44 = vadd.f32 1e-05, %v63_v43 }
  0x2b   :  { %76 = vrsqrt.f32 %v64_v44 }
  0x38   :  { %v77_v45 = vpop.eup %76 }
  0x39   :  { %v67_v46 = vrot.slane %v77_v45, 7 }
  0x3b   :  { %v69_v47 = vsel %vm50_vm2, %v59_v40, %v67_v46 }
  0x3c   :  { %70 = vst.msk [vmem:[%s118_s1] sm:$0x3] %vm12_vm0, %v69_v47 }

// kernel: gcn_forward.3
= control target key start
LH: loop header
LB: loop body
LE: loop exit
PB: predicated region body
PF: predicated region fallthrough
CT: control target
= control target key end

     0   :  { %v3444_v0 = vmov 0.0   ;;  %vm3445_vm0 = vmmov 0   ;;  %vm110_vm1 = vcmask 130048   ;;  %v3446_v27 = vmov 0   ;;  %s4360_s0 = inlined_call_operand.vmem [shape: f32[2,32], index: 0, kind: input, shape index: {}]   ;;  %s4361_s1 = inlined_call_operand.vmem [shape: f32[2,16,32], index: 1, kind: input, shape index: {}]   ;;  %s4362_s2 = inlined_call_operand.vmem [shape: bf16[2,16,16], index: 2, kind: input, shape index: {}]   ;;  %s4363_s5 = inlined_call_operand.vmem [shape: bf16[32,512], index: 5, kind: input, shape index: {}]   ;;  %s4364_s4 = inlined_call_operand.vmem [shape: bf16[32,512], index: 4, kind: input, shape index: {}]   ;;  %s4365_s8 = inlined_call_operand.vmem [shape: bf16[512,256], index: 8, kind: input, shape index: {}]   ;;  %s4366_s6 = inlined_call_operand.vmem [shape: f32[1,512], index: 6, kind: input, shape index: {}]   ;;  %s4367_s7 = inlined_call_operand.vmem [shape: bf16[512,256], index: 7, kind: input, shape index: {}]   ;;  %s4368_s11 = inlined_call_operand.vmem [shape: bf16[256,128], index: 11, kind: input, shape index: {}]   ;;  %s4369_s9 = inlined_call_operand.vmem [shape: f32[1,256], index: 9, kind: input, shape index: {}]   ;;  %s4370_s10 = inlined_call_operand.vmem [shape: bf16[256,128], index: 10, kind: input, shape index: {}]   ;;  %s4371_s14 = inlined_call_operand.vmem [shape: bf16[128,64], index: 14, kind: input, shape index: {}]   ;;  %s4372_s12 = inlined_call_operand.vmem [shape: f32[1,128], index: 12, kind: input, shape index: {}]   ;;  %s4373_s13 = inlined_call_operand.vmem [shape: bf16[128,64], index: 13, kind: input, shape index: {}]   ;;  %s4374_s3 = inlined_call_operand.vmem [shape: s32[2,8,1], index: 3, kind: input, shape index: {}]   ;;  %s4375_s16 = inlined_call_operand.vmem [shape: bf16[64,16], index: 16, kind: input, shape index: {}]   ;;  %s4376_s15 = inlined_call_operand.vmem [shape: f32[1,64], index: 15, kind: input, shape index: {}]   ;;  %s4377_s19 = inlined_call_operand.vmem [shape: bf16[16,2], index: 19, kind: input, shape index: {}]   ;;  %s4378_s17 = inlined_call_operand.vmem [shape: f32[1,16], index: 17, kind: input, shape index: {}]   ;;  %s4379_s18 = inlined_call_operand.vmem [shape: f32[1,16], index: 18, kind: input, shape index: {}]   ;;  %s4380_s20 = inlined_call_operand.vmem [shape: f32[1,2], index: 20, kind: input, shape index: {}]   ;;  %s4381_s21 = inlined_call_operand.vmem [shape: f32[2,8,2], index: 21, kind: output, shape index: {}]  }
   0x1   :  { %4388 = sst [smem:[#allocation2_spill]] %s4360_s0  ;;  %3061 = vmatprep.subr.bf16.mxu0 %v3444_v0  ;;  %3067 = vmatprep.subr.bf16.mxu1 %v3444_v0  ;;  %vm254_vm2 = vcmask 261120   ;;  %vm2609_vm5 = vcmask 523264   ;;  %vm2727_vm8 = vcmask 15360  }
   0x2   :  { %4389 = sst [smem:[#allocation3_spill]] %s4361_s1  ;;  %3063 = vmatprep.mubr.msk.bf16.mxu0 %vm3445_vm0, %v3444_v0  ;;  %3069 = vmatprep.mubr.msk.bf16.mxu1 %vm3445_vm0, %v3444_v0 }
   0x3   :  { %4390 = sst [smem:[#allocation4_spill]] %s4362_s2  ;;  %3170 = vset.pattern.permute.xlu0 %v3446_v27 }
   0x4   :  { %4391 = sst [smem:[#allocation5_spill]] %s4363_s5 }
   0x5   :  { %4392 = sst [smem:[#allocation6_spill]] %s4364_s4 }
   0x6   :  { %4393 = sst [smem:[#allocation7_spill]] %s4365_s8 }
   0x7   :  { %s4394_s26 = sld [smem:[#allocation2_spill]] }
   0x8   :  { %s4395_s0 = sld [smem:[#allocation3_spill]] }
   0x9   :  { %s4396_s25 = sld [smem:[#allocation4_spill]] }
   0xa   :  { %s4397_s5 = sld [smem:[#allocation5_spill]] }
   0xb   :  { %s4398_s8 = sld [smem:[#allocation6_spill]] }
   0xc   :  { %s4399_s1 = sld [smem:[#allocation7_spill]] }
   0xd   :  { %v2734_v1 = vld [vmem:[%s4394_s26] ss:$0 sm:$0xff]  ;;  %v2735_v2 = vld [vmem:[%s4394_s26 + $0x1] ss:$0 sm:$0xff] }
   0xe   :  { %v71_v3 = vld [vmem:[%s4395_s0] sm:$0xff]  ;;  %v72_v4 = vld [vmem:[%s4395_s0 + $0x8] sm:$0xff]  ;;  %v73_v6 = vld [vmem:[%s4395_s0 + $0x10] sm:$0xff] }
   0xf   :  { %v79_v5 = vsub.f32 %v71_v3, %v2734_v1  ;;  %v74_v7 = vld [vmem:[%s4395_s0 + $0x18] sm:$0xff]  ;;  %v80_v8 = vsub.f32 %v72_v4, %v2734_v1  ;;  %v81_v9 = vsub.f32 %v73_v6, %v2734_v1  ;;  %v3584_v15 = vld [vmem:[%s4396_s25] sm:$0xff]   ;;  %v3596_v19 = vld [vmem:[%s4396_s25 + $0x8] sm:$0xff]  }
  0x10   :  { %v82_v10 = vsub.f32 %v74_v7, %v2734_v1  ;;  %v3175_v16 = vld [vmem:[%s4397_s5 + $0x24] ss:$16 sps:$4 sm:$0xff]   ;;  %v3178_v20 = vld [vmem:[%s4397_s5 + $0x2c] ss:$16 sps:$4 sm:$0xff]   ;;  %v3173_v21 = vld [vmem:[%s4397_s5 + $0x20] ss:$16 sps:$4 sm:$0xff]  }
  0x11   :  { %v87_v11 = vmul.f32 %v2735_v2, %v79_v5  ;;  %v88_v12 = vmul.f32 %v2735_v2, %v80_v8  ;;  %v89_v13 = vmul.f32 %v2735_v2, %v81_v9  ;;  %v3176_v22 = vld [vmem:[%s4397_s5 + $0x28] ss:$16 sps:$4 sm:$0xff]   ;;  %v3181_v23 = vld [vmem:[%s4397_s5 + $0x4] ss:$16 sps:$4 sm:$0xff]   ;;  %v3184_v24 = vld [vmem:[%s4397_s5 + $0xc] ss:$16 sps:$4 sm:$0xff]  }
  0x12   :  { %v90_v14 = vmul.f32 %v2735_v2, %v82_v10  ;;  %v3179_v25 = vld [vmem:[%s4397_s5] ss:$16 sps:$4 sm:$0xff]   ;;  %v3182_v26 = vld [vmem:[%s4397_s5 + $0x8] ss:$16 sps:$4 sm:$0xff]   ;;  %v3187_v28 = vld [vmem:[%s4398_s8 + $0x24] ss:$16 sps:$4 sm:$0xff]  }
  0x13   :  { %v3589_v17 = vpack.c.bf16 %v88_v12, %v87_v11  ;;  %v3190_v29 = vld [vmem:[%s4398_s8 + $0x2c] ss:$16 sps:$4 sm:$0xff]   ;;  %v3185_v37 = vld [vmem:[%s4398_s8 + $0x20] ss:$16 sps:$4 sm:$0xff]   ;;  %v3188_v38 = vld [vmem:[%s4398_s8 + $0x28] ss:$16 sps:$4 sm:$0xff]  }
  0x14   :  { %v3591_v18 = vpack.c.bf16 %v90_v14, %v89_v13  ;;  %v3193_v41 = vld [vmem:[%s4398_s8 + $0x4] ss:$16 sps:$4 sm:$0xff]   ;;  %v3196_v42 = vld [vmem:[%s4398_s8 + $0xc] ss:$16 sps:$4 sm:$0xff]   ;;  %v3191_v43 = vld [vmem:[%s4398_s8] ss:$16 sps:$4 sm:$0xff]  }
  0x15   :  { %3062 = vmatpush3.bf16.msra.mxu0 %v3589_v17  ;;  %v3194_v44 = vld [vmem:[%s4398_s8 + $0x8] ss:$16 sps:$4 sm:$0xff]   ;;  %v3199_v45 = vld [vmem:[%s4399_s1 + $0x74] ss:$8 sps:$4 sm:$0xff]   ;;  %v3205_v50 = vld [vmem:[%s4399_s1 + $0x64] ss:$8 sps:$4 sm:$0xff]  }
  0x16   :  { %3068 = vmatpush3.bf16.msra.mxu1 %v3591_v18  ;;  %273 = vmatprep.subr.bf16.mxu0 %v3175_v16  ;;  %v3202_v46 = vld [vmem:[%s4399_s1 + $0x174] ss:$8 sps:$4 sm:$0xff]   ;;  %v3197_v48 = vld [vmem:[%s4399_s1 + $0x70] ss:$8 sps:$4 sm:$0xff]   ;;  %v3208_v51 = vld [vmem:[%s4399_s1 + $0x164] ss:$8 sps:$4 sm:$0xff]  }
  0x17   :  { %326 = vmatprep.subr.bf16.mxu1 %v3178_v20  ;;  %v3200_v49 = vld [vmem:[%s4399_s1 + $0x170] ss:$8 sps:$4 sm:$0xff]   ;;  %v3203_v52 = vld [vmem:[%s4399_s1 + $0x60] ss:$8 sps:$4 sm:$0xff]   ;;  %v3211_v54 = vld [vmem:[%s4399_s1 + $0x54] ss:$8 sps:$4 sm:$0xff]  }
  0x18   :  { %3064 = vmatmul.mubr.msk.bf16.vlgmr.msra.gmra.mxu0 %vm110_vm1, %v3584_v15  ;;  %v3206_v53 = vld [vmem:[%s4399_s1 + $0x160] ss:$8 sps:$4 sm:$0xff]   ;;  %v3214_v55 = vld [vmem:[%s4399_s1 + $0x154] ss:$8 sps:$4 sm:$0xff]   ;;  %v3209_v56 = vld [vmem:[%s4399_s1 + $0x50] ss:$8 sps:$4 sm:$0xff]  }
  0x19   :  { %3070 = vmatmul.mubr.msk.bf16.vlgmr.msra.gmra.mxu1 %vm110_vm1, %v3596_v19  ;;  %274 = vmatpush1.bf16.msra.mxu0 %v3173_v21  ;;  %v3212_v57 = vld [vmem:[%s4399_s1 + $0x150] ss:$8 sps:$4 sm:$0xff]   ;;  %v3217_v58 = vld [vmem:[%s4399_s1 + $0x44] ss:$8 sps:$4 sm:$0xff]   ;;  %v3215_v60 = vld [vmem:[%s4399_s1 + $0x40] ss:$8 sps:$4 sm:$0xff]  }
  0x1a   :  { %327 = vmatpush1.bf16.msra.mxu1 %v3176_v22  ;;  %275 = vmatprep.subr.bf16.mxu0 %v3181_v23  ;;  %v3220_v59 = vld [vmem:[%s4399_s1 + $0x144] ss:$8 sps:$4 sm:$0xff]   ;;  %v3218_v61 = vld [vmem:[%s4399_s1 + $0x140] ss:$8 sps:$4 sm:$0xff]   ;;  %v3223_v62 = vld [vmem:[%s4399_s1 + $0x34] ss:$8 sps:$4 sm:$0xff]  }
  0x1b   :  { %328 = vmatprep.subr.bf16.mxu1 %v3184_v24  ;;  %293 = vmatprep.mubr.bf16.mxu0 %v3446_v27  ;;  %v3226_v63 = vld [vmem:[%s4399_s1 + $0x134] ss:$8 sps:$4 sm:$0xff]   ;;  %v3221_v1 = vld [vmem:[%s4399_s1 + $0x30] ss:$8 sps:$4 sm:$0xff]   ;;  %v3229_v3 = vld [vmem:[%s4399_s1 + $0x24] ss:$8 sps:$4 sm:$0xff]  }
  0x1c   :  { %346 = vmatprep.mubr.bf16.mxu1 %v3446_v27  ;;  %v3224_v2 = vld [vmem:[%s4399_s1 + $0x130] ss:$8 sps:$4 sm:$0xff]   ;;  %v3232_v4 = vld [vmem:[%s4399_s1 + $0x124] ss:$8 sps:$4 sm:$0xff]   ;;  %v3227_v5 = vld [vmem:[%s4399_s1 + $0x20] ss:$8 sps:$4 sm:$0xff]  }
  0x1d   :  { %276 = vmatpush1.bf16.msra.mxu0 %v3179_v25  ;;  %v3230_v6 = vld [vmem:[%s4399_s1 + $0x120] ss:$8 sps:$4 sm:$0xff]   ;;  %v3235_v7 = vld [vmem:[%s4399_s1 + $0x14] ss:$8 sps:$4 sm:$0xff]   ;;  %v3233_v9 = vld [vmem:[%s4399_s1 + $0x10] ss:$8 sps:$4 sm:$0xff]  }
  0x1e   :  { %329 = vmatpush1.bf16.msra.mxu1 %v3182_v26  ;;  %425 = vmatprep.subr.bf16.mxu0 %v3187_v28  ;;  %v3238_v8 = vld [vmem:[%s4399_s1 + $0x114] ss:$8 sps:$4 sm:$0xff]   ;;  %v3236_v10 = vld [vmem:[%s4399_s1 + $0x110] ss:$8 sps:$4 sm:$0xff]   ;;  %v3241_v11 = vld [vmem:[%s4399_s1 + $0x4] ss:$8 sps:$4 sm:$0xff]  }
  0x1f   :  { %478 = vmatprep.subr.bf16.mxu1 %v3190_v29  ;;  %v3244_v12 = vld [vmem:[%s4399_s1 + $0x104] ss:$8 sps:$4 sm:$0xff]   ;;  %v3239_v13 = vld [vmem:[%s4399_s1] ss:$8 sps:$4 sm:$0xff]   ;;  %v3247_v16 = vld [vmem:[%s4399_s1 + $0xf4] ss:$8 sps:$4 sm:$0xff]  }
  0x20   :  { %v3242_v14 = vld [vmem:[%s4399_s1 + $0x100] ss:$8 sps:$4 sm:$0xff]   ;;  %v3248_v20 = vld [vmem:[%s4399_s1 + $0x1f0] ss:$8 sps:$4 sm:$0xff]   ;;  %v3253_v21 = vld [vmem:[%s4399_s1 + $0xe4] ss:$8 sps:$4 sm:$0xff]  }
  0x21   :  { %v3256_v22 = vld [vmem:[%s4399_s1 + $0x1e4] ss:$8 sps:$4 sm:$0xff]   ;;  %v3251_v23 = vld [vmem:[%s4399_s1 + $0xe0] ss:$8 sps:$4 sm:$0xff]   ;;  %v3259_v25 = vld [vmem:[%s4399_s1 + $0xd4] ss:$8 sps:$4 sm:$0xff]  }
  0x22   :  { %v3254_v24 = vld [vmem:[%s4399_s1 + $0x1e0] ss:$8 sps:$4 sm:$0xff]   ;;  %v3262_v26 = vld [vmem:[%s4399_s1 + $0x1d4] ss:$8 sps:$4 sm:$0xff]   ;;  %v3257_v28 = vld [vmem:[%s4399_s1 + $0xd0] ss:$8 sps:$4 sm:$0xff]  }
  0x23   :  { %v3260_v29 = vld [vmem:[%s4399_s1 + $0x1d0] ss:$8 sps:$4 sm:$0xff]  }
  0xd8   :  { %v148_v30 = vpop.f32.mrf.mxu0 }
  0xd9   :  { %v197_v31 = vpop.f32.mrf.mxu1 }
  0xda   :  { %v3065_v32 = vpop.f32.mrf.mxu0 }
  0xdb   :  { %v3071_v33 = vpop.f32.mrf.mxu1  ;;  %v3263_v32 = vld [vmem:[%s4399_s1 + $0xc0] ss:$8 sps:$4 sm:$0xff]  }
  0xdc   :  { %v151_v34 = vpop.f32.mrf.mxu0  ;;  %v3266_v33 = vld [vmem:[%s4399_s1 + $0x1c0] ss:$8 sps:$4 sm:$0xff]  }
  0xdd   :  { %v200_v35 = vpop.f32.mrf.mxu1  ;;  %v204_v36 = vpack.c.bf16 %v151_v34, %v148_v30  ;;  %v3265_v30 = vld [vmem:[%s4399_s1 + $0xc4] ss:$8 sps:$4 sm:$0xff]   ;;  %v3271_v34 = vld [vmem:[%s4399_s1 + $0xb4] ss:$8 sps:$4 sm:$0xff]  }
  0xde   :  { %v3066_v39 = vpop.f32.mrf.mxu0  ;;  %v205_v47 = vpack.c.bf16 %v200_v35, %v197_v31  ;;  %v3268_v31 = vld [vmem:[%s4399_s1 + $0x1c4] ss:$8 sps:$4 sm:$0xff]   ;;  %v3274_v35 = vld [vmem:[%s4399_s1 + $0x1b4] ss:$8 sps:$4 sm:$0xff]  }
  0xdf   :  { %v3072_v40 = vpop.f32.mrf.mxu1  ;;  %2748 = vmatmul.mubr.msk.bf16.vlgmr.msra.gmra.mxu0 %vm254_vm2, %v204_v36  ;;  %2750 = vmatmul.mubr.msk.bf16.vlgmr.msra.gmra.mxu1 %vm254_vm2, %v204_v36  ;;  %v3269_v36 = vld [vmem:[%s4399_s1 + $0xb0] ss:$8 sps:$4 sm:$0xff]   ;;  %v3280_v39 = vld [vmem:[%s4399_s1 + $0x1a4] ss:$8 sps:$4 sm:$0xff]  }
  0xe0   :  { %303 = vmatprep.mubr.bf16.mxu0 %v3446_v27  ;;  %356 = vmatprep.mubr.bf16.mxu1 %v3446_v27  ;;  %v3275_v40 = vld [vmem:[%s4399_s1 + $0xa0] ss:$8 sps:$4 sm:$0xff]  }
  0xe1   :  { %426 = vmatpush1.bf16.msra.mxu0 %v3185_v37  ;;  %479 = vmatpush1.bf16.msra.mxu1 %v3188_v38  ;;  %v3272_v37 = vld [vmem:[%s4399_s1 + $0x1b0] ss:$8 sps:$4 sm:$0xff]   ;;  %v3277_v38 = vld [vmem:[%s4399_s1 + $0xa4] ss:$8 sps:$4 sm:$0xff]  }
  0xe2   :  { %427 = vmatprep.subr.bf16.mxu0 %v3193_v41  ;;  %480 = vmatprep.subr.bf16.mxu1 %v3196_v42  ;;  %v3278_v41 = vld [vmem:[%s4399_s1 + $0x1a0] ss:$8 sps:$4 sm:$0xff]   ;;  %v3283_v42 = vld [vmem:[%s4399_s1 + $0x94] ss:$8 sps:$4 sm:$0xff]  }
  0xe5   :  { %428 = vmatpush1.bf16.msra.mxu0 %v3191_v43  ;;  %481 = vmatpush1.bf16.msra.mxu1 %v3194_v44  ;;  %v3286_v43 = vld [vmem:[%s4399_s1 + $0x194] ss:$8 sps:$4 sm:$0xff]   ;;  %v3281_v44 = vld [vmem:[%s4399_s1 + $0x90] ss:$8 sps:$4 sm:$0xff]  }
  0xe6   :  { %1029 = vmatprep.subr.bf16.mxu0 %v3199_v45  ;;  %1082 = vmatprep.subr.bf16.mxu1 %v3202_v46  ;;  %v3284_v45 = vld [vmem:[%s4399_s1 + $0x190] ss:$8 sps:$4 sm:$0xff]   ;;  %v3289_v46 = vld [vmem:[%s4399_s1 + $0x84] ss:$8 sps:$4 sm:$0xff]  }
  0xe7   :  { %2749 = vmatmul.mubr.msk.bf16.gmra.mxu0 %vm254_vm2, %v205_v47  ;;  %2751 = vmatmul.mubr.msk.bf16.gmra.mxu1 %vm254_vm2, %v205_v47  ;;  %v3292_v47 = vld [vmem:[%s4399_s1 + $0x184] ss:$8 sps:$4 sm:$0xff]  }
  0xe8   :  { %445 = vmatprep.mubr.bf16.mxu0 %v3446_v27  ;;  %498 = vmatprep.mubr.bf16.mxu1 %v3446_v27 }
  0xef   :  { %2760 = vmatmul.mubr.msk.bf16.vlgmr.msra.gmra.mxu0 %vm254_vm2, %v3589_v17  ;;  %2762 = vmatmul.mubr.msk.bf16.vlgmr.msra.gmra.mxu1 %vm254_vm2, %v3589_v17  ;;  %v3250_v17 = vld [vmem:[%s4399_s1 + $0x1f4] ss:$8 sps:$4 sm:$0xff]  }
  0xf0   :  { %455 = vmatprep.mubr.bf16.mxu0 %v3446_v27  ;;  %508 = vmatprep.mubr.bf16.mxu1 %v3446_v27 }
  0xf1   :  { %1030 = vmatpush1.bf16.msra.mxu0 %v3197_v48  ;;  %1083 = vmatpush1.bf16.msra.mxu1 %v3200_v49  ;;  %v3287_v48 = vld [vmem:[%s4399_s1 + $0x80] ss:$8 sps:$4 sm:$0xff]  }
  0xf2   :  { %1031 = vmatprep.subr.bf16.mxu0 %v3205_v50  ;;  %1084 = vmatprep.subr.bf16.mxu1 %v3208_v51  ;;  %v3290_v49 = vld [vmem:[%s4399_s1 + $0x180] ss:$8 sps:$4 sm:$0xff]  }
  0xf5   :  { %1032 = vmatpush1.bf16.msra.mxu0 %v3203_v52  ;;  %1085 = vmatpush1.bf16.msra.mxu1 %v3206_v53 }
  0xf6   :  { %1033 = vmatprep.subr.bf16.mxu0 %v3211_v54  ;;  %1086 = vmatprep.subr.bf16.mxu1 %v3214_v55 }
  0xf7   :  { %2761 = vmatmul.mubr.msk.bf16.gmra.mxu0 %vm254_vm2, %v3591_v18  ;;  %2763 = vmatmul.mubr.msk.bf16.gmra.mxu1 %vm254_vm2, %v3591_v18  ;;  %v3245_v18 = vld [vmem:[%s4399_s1 + $0xf0] ss:$8 sps:$4 sm:$0xff]  }
  0xf9   :  { %1034 = vmatpush1.bf16.msra.mxu0 %v3209_v56  ;;  %1087 = vmatpush1.bf16.msra.mxu1 %v3212_v57 }
  0xfa   :  { %1035 = vmatprep.subr.bf16.mxu0 %v3217_v58  ;;  %1088 = vmatprep.subr.bf16.mxu1 %v3220_v59  ;;  %v521_v58 = vlaneseq }
  0xfd   :  { %1036 = vmatpush1.bf16.msra.mxu0 %v3215_v60  ;;  %1089 = vmatpush1.bf16.msra.mxu1 %v3218_v61 }
  0xfe   :  { %1037 = vmatprep.subr.bf16.mxu0 %v3223_v62  ;;  %1090 = vmatprep.subr.bf16.mxu1 %v3226_v63  ;;  %v3863_v63 = vshrl.u32 %v521_v58, 7 }
 0x101   :  { %1038 = vmatpush1.bf16.msra.mxu0 %v3221_v1  ;;  %1091 = vmatpush1.bf16.msra.mxu1 %v3224_v2 }
 0x102   :  { %1039 = vmatprep.subr.bf16.mxu0 %v3229_v3  ;;  %1092 = vmatprep.subr.bf16.mxu1 %v3232_v4 }
 0x105   :  { %1040 = vmatpush1.bf16.msra.mxu0 %v3227_v5  ;;  %1093 = vmatpush1.bf16.msra.mxu1 %v3230_v6  ;;  %v523_v5 = vsub.s32 0, %v3863_v63  ;;  %v531_v6 = vsub.s32 2, %v3863_v63 }
 0x106   :  { %1041 = vmatprep.subr.bf16.mxu0 %v3235_v7  ;;  %1094 = vmatprep.subr.bf16.mxu1 %v3238_v8  ;;  %v519_v7 = vld [vmem:[%s4366_s6] sm:$0xf]  ;;  %v527_v8 = vsub.s32 1, %v3863_v63 }
 0x109   :  { %1042 = vmatpush1.bf16.msra.mxu0 %v3233_v9  ;;  %1095 = vmatpush1.bf16.msra.mxu1 %v3236_v10  ;;  %v535_v9 = vsub.s32 3, %v3863_v63 }
 0x10a   :  { %1043 = vmatprep.subr.bf16.mxu0 %v3241_v11  ;;  %1096 = vmatprep.subr.bf16.mxu1 %v3244_v12 }
 0x10d   :  { %1044 = vmatpush1.bf16.msra.mxu0 %v3239_v13  ;;  %1097 = vmatpush1.bf16.msra.mxu1 %v3242_v14  ;;  %v524_v13 = vrot.slane %v519_v7, %v523_v5 }
 0x10e   :  { %1045 = vmatprep.subr.bf16.mxu0 %v3247_v16  ;;  %1098 = vmatprep.subr.bf16.mxu1 %v3250_v17  ;;  %v532_v16 = vrot.slane %v519_v7, %v531_v6 }
 0x111   :  { %1046 = vmatpush2.bf16.msra.mxu0 %v3245_v18  ;;  %1099 = vmatpush2.bf16.msra.mxu1 %v3248_v20 }
 0x112   :  { %1047 = vmatprep.subr.bf16.mxu0 %v3253_v21  ;;  %1100 = vmatprep.subr.bf16.mxu1 %v3256_v22  ;;  %v528_v21 = vrot.slane %v519_v7, %v527_v8 }
 0x115   :  { %1048 = vmatpush2.bf16.msra.mxu0 %v3251_v23  ;;  %1101 = vmatpush2.bf16.msra.mxu1 %v3254_v24  ;;  %v536_v23 = vrot.slane %v519_v7, %v535_v9 }
 0x116   :  { %1049 = vmatprep.subr.bf16.mxu0 %v3259_v25  ;;  %1102 = vmatprep.subr.bf16.mxu1 %v3262_v26 }
 0x119   :  { %1050 = vmatpush2.bf16.msra.mxu0 %v3257_v28  ;;  %1103 = vmatpush2.bf16.msra.mxu1 %v3260_v29 }
 0x11a   :  { %1051 = vmatprep.subr.bf16.mxu0 %v3265_v30  ;;  %1104 = vmatprep.subr.bf16.mxu1 %v3268_v31 }
 0x11d   :  { %1052 = vmatpush2.bf16.msra.mxu0 %v3263_v32  ;;  %1105 = vmatpush2.bf16.msra.mxu1 %v3266_v33 }
 0x11e   :  { %1053 = vmatprep.subr.bf16.mxu0 %v3271_v34  ;;  %1106 = vmatprep.subr.bf16.mxu1 %v3274_v35 }
 0x121   :  { %1054 = vmatpush2.bf16.msra.mxu0 %v3269_v36  ;;  %1107 = vmatpush2.bf16.msra.mxu1 %v3272_v37 }
 0x122   :  { %1055 = vmatprep.subr.bf16.mxu0 %v3277_v38  ;;  %1108 = vmatprep.subr.bf16.mxu1 %v3280_v39 }
 0x125   :  { %1056 = vmatpush2.bf16.msra.mxu0 %v3275_v40  ;;  %1109 = vmatpush2.bf16.msra.mxu1 %v3278_v41 }
 0x126   :  { %1057 = vmatprep.subr.bf16.mxu0 %v3283_v42  ;;  %1110 = vmatprep.subr.bf16.mxu1 %v3286_v43 }
 0x129   :  { %1058 = vmatpush2.bf16.msra.mxu0 %v3281_v44  ;;  %1111 = vmatpush2.bf16.msra.mxu1 %v3284_v45 }
 0x12a   :  { %1059 = vmatprep.subr.bf16.mxu0 %v3289_v46  ;;  %1112 = vmatprep.subr.bf16.mxu1 %v3292_v47 }
 0x12d   :  { %1060 = vmatpush2.bf16.msra.mxu0 %v3287_v48  ;;  %1113 = vmatpush2.bf16.msra.mxu1 %v3290_v49 }
 0x19f   :  { %v295_v50 = vpop.f32.mrf.mxu0  ;;  %v348_v51 = vpop.f32.mrf.mxu1 }
 0x1a1   :  { %v297_v52 = vpop.f32.mrf.mxu0  ;;  %v350_v53 = vpop.f32.mrf.mxu1 }
 0x1a3   :  { %v299_v54 = vpop.f32.mrf.mxu0  ;;  %v352_v55 = vpop.f32.mrf.mxu1 }
 0x1a5   :  { %v301_v56 = vpop.f32.mrf.mxu0  ;;  %v354_v57 = vpop.f32.mrf.mxu1 }
 0x1a7   :  { %v305_v59 = vpop.f32.mrf.mxu0  ;;  %v358_v60 = vpop.f32.mrf.mxu1 }
 0x1a9   :  { %v307_v61 = vpop.f32.mrf.mxu0  ;;  %v360_v62 = vpop.f32.mrf.mxu1 }
 0x1ab   :  { %v309_v1 = vpop.f32.mrf.mxu0  ;;  %v362_v2 = vpop.f32.mrf.mxu1 }
 0x1ad   :  { %v3865_v3 = vpop.f32.mrf.mxu0  ;;  %v3867_v4 = vpop.f32.mrf.mxu1 }
 0x1af   :  { %v447_v10 = vpop.f32.mrf.mxu0  ;;  %v500_v11 = vpop.f32.mrf.mxu1 }
 0x1b0   :  { %v448_v12 = vadd.f32 %v447_v10, %v295_v50  ;;  %v501_v14 = vadd.f32 %v500_v11, %v348_v51 }
 0x1b1   :  { %v449_v17 = vpop.f32.mrf.mxu0  ;;  %v502_v18 = vpop.f32.mrf.mxu1 }
 0x1b2   :  { %v450_v20 = vadd.f32 %v449_v17, %v297_v52  ;;  %v503_v22 = vadd.f32 %v502_v18, %v350_v53  ;;  %v541_v26 = vadd.f32 %v524_v13, %v448_v12  ;;  %v543_v28 = vadd.f32 %v532_v16, %v501_v14 }
 0x1b3   :  { %v451_v24 = vpop.f32.mrf.mxu0  ;;  %v504_v25 = vpop.f32.mrf.mxu1 }
 0x1b4   :  { %v452_v29 = vadd.f32 %v451_v24, %v299_v54  ;;  %v505_v30 = vadd.f32 %v504_v25, %v352_v55  ;;  %v542_v33 = vadd.f32 %v528_v21, %v450_v20  ;;  %v544_v34 = vadd.f32 %v536_v23, %v503_v22 }
 0x1b5   :  { %v453_v31 = vpop.f32.mrf.mxu0  ;;  %v506_v32 = vpop.f32.mrf.mxu1  ;;  %v557_v43 = vmax.f32 %v541_v26, 0.0  ;;  %v559_v44 = vmax.f32 %v543_v28, 0.0 }
 0x1b6   :  { %v454_v35 = vadd.f32 %v453_v31, %v301_v56  ;;  %v507_v36 = vadd.f32 %v506_v32, %v354_v57  ;;  %v545_v37 = vadd.f32 %v524_v13, %v452_v29  ;;  %v547_v38 = vadd.f32 %v532_v16, %v505_v30 }
 0x1b7   :  { %v457_v39 = vpop.f32.mrf.mxu0  ;;  %v510_v40 = vpop.f32.mrf.mxu1  ;;  %v558_v49 = vmax.f32 %v542_v33, 0.0  ;;  %v560_v50 = vmax.f32 %v544_v34, 0.0 }
 0x1b8   :  { %v546_v41 = vadd.f32 %v528_v21, %v454_v35  ;;  %v548_v42 = vadd.f32 %v536_v23, %v507_v36  ;;  %v561_v45 = vmax.f32 %v545_v37, 0.0  ;;  %v563_v46 = vmax.f32 %v547_v38, 0.0 }
 0x1b9   :  { %v459_v47 = vpop.f32.mrf.mxu0  ;;  %v512_v48 = vpop.f32.mrf.mxu1  ;;  %v458_v53 = vadd.f32 %v457_v39, %v305_v59  ;;  %v511_v54 = vadd.f32 %v510_v40, %v358_v60 }
 0x1ba   :  { %v562_v51 = vmax.f32 %v546_v41, 0.0  ;;  %v564_v52 = vmax.f32 %v548_v42, 0.0  ;;  %v460_v55 = vadd.f32 %v459_v47, %v307_v61  ;;  %v513_v56 = vadd.f32 %v512_v48, %v360_v62  ;;  %v3295_v48 = vld [vmem:[%s4367_s7 + $0x74] ss:$8 sps:$4 sm:$0xff]  }
 0x1bb   :  { %v461_v57 = vpop.f32.mrf.mxu0  ;;  %v514_v6 = vpop.f32.mrf.mxu1  ;;  %v3880_v7 = vpack.c.bf16 %v561_v45, %v557_v43  ;;  %v3882_v9 = vpack.c.bf16 %v563_v46, %v559_v44  ;;  %v549_v24 = vadd.f32 %v524_v13, %v458_v53  ;;  %v3293_v53 = vld [vmem:[%s4367_s7 + $0x70] ss:$8 sps:$4 sm:$0xff]  }
 0x1bc   :  { %v462_v10 = vadd.f32 %v461_v57, %v309_v1  ;;  %v515_v11 = vadd.f32 %v514_v6, %v362_v2  ;;  %v550_v12 = vadd.f32 %v528_v21, %v460_v55  ;;  %v552_v14 = vadd.f32 %v536_v23, %v513_v56 }
 0x1bd   :  { %v463_v17 = vpop.f32.mrf.mxu0  ;;  %v516_v18 = vpop.f32.mrf.mxu1  ;;  %v3884_v20 = vpack.c.bf16 %v562_v51, %v558_v49  ;;  %v3886_v22 = vpack.c.bf16 %v564_v52, %v560_v50  ;;  %v551_v1 = vadd.f32 %v532_v16, %v511_v54  ;;  %v565_v32 = vmax.f32 %v549_v24, 0.0  ;;  %v3298_v54 = vld [vmem:[%s4367_s7 + $0x64] ss:$8 sps:$4 sm:$0xff]   ;;  %v3308_v24 = vld [vmem:[%s4367_s7 + $0x160] ss:$8 sps:$4 sm:$0xff]  }
 0x1be   :  { %v553_v59 = vadd.f32 %v524_v13, %v462_v10  ;;  %v555_v60 = vadd.f32 %v532_v16, %v515_v11  ;;  %v464_v61 = vadd.f32 %v463_v17, %v3865_v3  ;;  %v517_v62 = vadd.f32 %v516_v18, %v3867_v4  ;;  %v3301_v17 = vld [vmem:[%s4367_s7 + $0x54] ss:$8 sps:$4 sm:$0xff]  }
 0x1bf   :  { %1061 = vmatprep.mubr.bf16.mxu0 %v3884_v20  ;;  %1114 = vmatprep.mubr.bf16.mxu1 %v3886_v22  ;;  %v566_v26 = vmax.f32 %v550_v12, 0.0  ;;  %v568_v28 = vmax.f32 %v552_v14, 0.0  ;;  %v567_v4 = vmax.f32 %v551_v1, 0.0  ;;  %v3296_v12 = vld [vmem:[%s4367_s7 + $0x60] ss:$8 sps:$4 sm:$0xff]  }
 0x1c0   :  { %v554_v2 = vadd.f32 %v528_v21, %v464_v61  ;;  %v556_v25 = vadd.f32 %v536_v23, %v517_v62  ;;  %1062 = vmatmul.mubr.bf16.vlgmr.msra.gmra.mxu0 %v3880_v7  ;;  %1115 = vmatmul.mubr.bf16.vlgmr.msra.gmra.mxu1 %v3882_v9  ;;  %v569_v29 = vmax.f32 %v553_v59, 0.0  ;;  %v571_v30 = vmax.f32 %v555_v60, 0.0  ;;  %v3304_v18 = vld [vmem:[%s4367_s7 + $0x174] ss:$8 sps:$4 sm:$0xff]   ;;  %v3307_v60 = vld [vmem:[%s4367_s7 + $0x44] ss:$8 sps:$4 sm:$0xff]  }
 0x1c1   :  { %v3310_v61 = vld [vmem:[%s4367_s7 + $0x164] ss:$8 sps:$4 sm:$0xff]   ;;  %v3305_v62 = vld [vmem:[%s4367_s7 + $0x40] ss:$8 sps:$4 sm:$0xff]   ;;  %v3313_v1 = vld [vmem:[%s4367_s7 + $0x34] ss:$8 sps:$4 sm:$0xff]  }
 0x1c2   :  { %v570_v31 = vmax.f32 %v554_v2, 0.0  ;;  %v572_v3 = vmax.f32 %v556_v25, 0.0  ;;  %v3900_v16 = vpack.c.bf16 %v569_v29, %v565_v32  ;;  %v3902_v21 = vpack.c.bf16 %v571_v30, %v567_v4  ;;  %v3311_v2 = vld [vmem:[%s4367_s7 + $0x30] ss:$8 sps:$4 sm:$0xff]   ;;  %v3319_v25 = vld [vmem:[%s4367_s7 + $0x24] ss:$8 sps:$4 sm:$0xff]  }
 0x1c3   :  { %v3320_v29 = vld [vmem:[%s4367_s7 + $0x140] ss:$8 sps:$4 sm:$0xff]   ;;  %v3325_v30 = vld [vmem:[%s4367_s7 + $0x14] ss:$8 sps:$4 sm:$0xff]   ;;  %v3326_v32 = vld [vmem:[%s4367_s7 + $0x130] ss:$8 sps:$4 sm:$0xff]  }
 0x1c4   :  { %v3894_v13 = vpack.c.bf16 %v570_v31, %v566_v26  ;;  %v3896_v33 = vpack.c.bf16 %v572_v3, %v568_v28  ;;  %v3322_v26 = vld [vmem:[%s4367_s7 + $0x144] ss:$8 sps:$4 sm:$0xff]   ;;  %v3317_v28 = vld [vmem:[%s4367_s7 + $0x20] ss:$8 sps:$4 sm:$0xff]   ;;  %v3328_v31 = vld [vmem:[%s4367_s7 + $0x134] ss:$8 sps:$4 sm:$0xff]  }
 0x1c5   :  { %v3323_v3 = vld [vmem:[%s4367_s7 + $0x10] ss:$8 sps:$4 sm:$0xff]   ;;  %v3331_v4 = vld [vmem:[%s4367_s7 + $0x4] ss:$8 sps:$4 sm:$0xff]  }
 0x1c6   :  { %1071 = vmatprep.mubr.bf16.mxu0 %v3894_v13  ;;  %1124 = vmatprep.mubr.bf16.mxu1 %v3896_v33 }
 0x1c8   :  { %1072 = vmatmul.mubr.bf16.gmra.mxu0 %v3900_v16  ;;  %1125 = vmatmul.mubr.bf16.gmra.mxu1 %v3902_v21 }
 0x1c9   :  { %1171 = vmatprep.mubr.bf16.mxu0 %v3446_v27  ;;  %1214 = vmatprep.mubr.bf16.mxu1 %v3446_v27 }
 0x280   :  { %v1063_v23 = vpop.f32.mrf.mxu0  ;;  %v1116_v34 = vpop.f32.mrf.mxu1 }
 0x281   :  { %v1117_v44 = vadd.f32 %v1116_v34, %v1063_v23  ;;  %v3334_v23 = vld [vmem:[%s4367_s7 + $0x124] ss:$8 sps:$4 sm:$0xff]   ;;  %v3329_v34 = vld [vmem:[%s4367_s7] ss:$8 sps:$4 sm:$0xff]  }
 0x282   :  { %v1065_v35 = vpop.f32.mrf.mxu0  ;;  %v1118_v36 = vpop.f32.mrf.mxu1 }
 0x283   :  { %v1119_v42 = vadd.f32 %v1118_v36, %v1065_v35  ;;  %v3332_v35 = vld [vmem:[%s4367_s7 + $0x120] ss:$8 sps:$4 sm:$0xff]   ;;  %v3337_v36 = vld [vmem:[%s4367_s7 + $0xf4] ss:$8 sps:$4 sm:$0xff]  }
 0x284   :  { %v1067_v37 = vpop.f32.mrf.mxu0  ;;  %v1120_v38 = vpop.f32.mrf.mxu1 }
 0x285   :  { %v1121_v39 = vadd.f32 %v1120_v38, %v1067_v37  ;;  %v3340_v37 = vld [vmem:[%s4367_s7 + $0x114] ss:$8 sps:$4 sm:$0xff]   ;;  %v3335_v38 = vld [vmem:[%s4367_s7 + $0xf0] ss:$8 sps:$4 sm:$0xff]  }
 0x286   :  { %v1069_v40 = vpop.f32.mrf.mxu0  ;;  %v1122_v41 = vpop.f32.mrf.mxu1 }
 0x287   :  { %v1123_v43 = vadd.f32 %v1122_v41, %v1069_v40  ;;  %v1135_v27 = vpack.c.bf16 %v1121_v39, %v1117_v44  ;;  %v3338_v39 = vld [vmem:[%s4367_s7 + $0x110] ss:$8 sps:$4 sm:$0xff]   ;;  %v3343_v40 = vld [vmem:[%s4367_s7 + $0xe4] ss:$8 sps:$4 sm:$0xff]   ;;  %v3349_v44 = vld [vmem:[%s4367_s7 + $0xd4] ss:$8 sps:$4 sm:$0xff]  }
 0x288   :  { %v1073_v45 = vpop.f32.mrf.mxu0  ;;  %v1126_v46 = vpop.f32.mrf.mxu1  ;;  %v3346_v41 = vld [vmem:[%s4367_s7 + $0x104] ss:$8 sps:$4 sm:$0xff]  }
 0x289   :  { %v1136_v47 = vpack.c.bf16 %v1123_v43, %v1119_v42  ;;  %v1127_v11 = vadd.f32 %v1126_v46, %v1073_v45  ;;  %v3341_v42 = vld [vmem:[%s4367_s7 + $0xe0] ss:$8 sps:$4 sm:$0xff]   ;;  %v3352_v45 = vld [vmem:[%s4367_s7 + $0x1f4] ss:$8 sps:$4 sm:$0xff]   ;;  %v3347_v46 = vld [vmem:[%s4367_s7 + $0xd0] ss:$8 sps:$4 sm:$0xff]  }
 0x28a   :  { %v1075_v49 = vpop.f32.mrf.mxu0  ;;  %v1128_v50 = vpop.f32.mrf.mxu1  ;;  %v3344_v43 = vld [vmem:[%s4367_s7 + $0x100] ss:$8 sps:$4 sm:$0xff]  }
 0x28b   :  { %1153 = vmatprep.subr.bf16.mxu0 %v1136_v47  ;;  %v1129_v6 = vadd.f32 %v1128_v50, %v1075_v49  ;;  %v3350_v47 = vld [vmem:[%s4367_s7 + $0x1f0] ss:$8 sps:$4 sm:$0xff]   ;;  %v3353_v49 = vld [vmem:[%s4367_s7 + $0xc0] ss:$8 sps:$4 sm:$0xff]  }
 0x28c   :  { %v1077_v51 = vpop.f32.mrf.mxu0  ;;  %v1130_v52 = vpop.f32.mrf.mxu1  ;;  %1154 = vmatpush1.bf16.msra.mxu0 %v1135_v27  ;;  %v3358_v27 = vld [vmem:[%s4367_s7 + $0x1e4] ss:$8 sps:$4 sm:$0xff]   ;;  %v3356_v50 = vld [vmem:[%s4367_s7 + $0x1e0] ss:$8 sps:$4 sm:$0xff]  }
 0x28d   :  { %1545 = vmatprep.subr.bf16.mxu0 %v3295_v48  ;;  %v1131_v55 = vadd.f32 %v1130_v52, %v1077_v51  ;;  %v3355_v48 = vld [vmem:[%s4367_s7 + $0xc4] ss:$8 sps:$4 sm:$0xff]   ;;  %v3361_v51 = vld [vmem:[%s4367_s7 + $0xb4] ss:$8 sps:$4 sm:$0xff]  }
 0x28e   :  { %v1079_v56 = vpop.f32.mrf.mxu0  ;;  %v1132_v57 = vpop.f32.mrf.mxu1  ;;  %v3364_v52 = vld [vmem:[%s4367_s7 + $0x1d4] ss:$8 sps:$4 sm:$0xff]  }
 0x28f   :  { %v1133_v10 = vadd.f32 %v1132_v57, %v1079_v56  ;;  %2828 = vmatmul.mubr.msk.bf16.vlgmr.msra.gmra.mxu0 %vm110_vm1, %v3584_v15  ;;  %v1137_v59 = vpack.c.bf16 %v1131_v55, %v1127_v11  ;;  %v3299_v15 = vld [vmem:[%s4367_s7 + $0x50] ss:$8 sps:$4 sm:$0xff]   ;;  %v3367_v55 = vld [vmem:[%s4367_s7 + $0xa4] ss:$8 sps:$4 sm:$0xff]   ;;  %v3365_v57 = vld [vmem:[%s4367_s7 + $0xa0] ss:$8 sps:$4 sm:$0xff]  }
 0x290   :  { %1546 = vmatpush1.bf16.msra.mxu0 %v3293_v53  ;;  %1577 = vmatprep.mubr.bf16.mxu0 %v3884_v20  ;;  %v3302_v20 = vld [vmem:[%s4367_s7 + $0x170] ss:$8 sps:$4 sm:$0xff]   ;;  %v3370_v56 = vld [vmem:[%s4367_s7 + $0x1c4] ss:$8 sps:$4 sm:$0xff]   ;;  %v3376_v11 = vld [vmem:[%s4367_s7 + $0x1b4] ss:$8 sps:$4 sm:$0xff]  }
 0x291   :  { %v1138_v14 = vpack.c.bf16 %v1133_v10, %v1129_v6  ;;  %1547 = vmatprep.subr.bf16.mxu0 %v3298_v54  ;;  %v3359_v53 = vld [vmem:[%s4367_s7 + $0xb0] ss:$8 sps:$4 sm:$0xff]   ;;  %v3368_v6 = vld [vmem:[%s4367_s7 + $0x1c0] ss:$8 sps:$4 sm:$0xff]   ;;  %v3373_v10 = vld [vmem:[%s4367_s7 + $0x94] ss:$8 sps:$4 sm:$0xff]  }
 0x292   :  { %v3362_v54 = vld [vmem:[%s4367_s7 + $0x1d0] ss:$8 sps:$4 sm:$0xff]  }
 0x293   :  { %1196 = vmatprep.subr.bf16.mxu1 %v1138_v14  ;;  %v3374_v14 = vld [vmem:[%s4367_s7 + $0x1b0] ss:$8 sps:$4 sm:$0xff]  }
 0x294   :  { %1197 = vmatpush1.bf16.msra.mxu1 %v1137_v59  ;;  %1548 = vmatpush1.bf16.msra.mxu0 %v3296_v12  ;;  %v3371_v12 = vld [vmem:[%s4367_s7 + $0x90] ss:$8 sps:$4 sm:$0xff]   ;;  %v3377_v59 = vld [vmem:[%s4367_s7 + $0x80] ss:$8 sps:$4 sm:$0xff]  }
 0x295   :  { %1549 = vmatprep.subr.bf16.mxu0 %v3301_v17  ;;  %1598 = vmatprep.subr.bf16.mxu1 %v3304_v18  ;;  %v3379_v17 = vld [vmem:[%s4367_s7 + $0x84] ss:$8 sps:$4 sm:$0xff]  }
 0x296   :  { %v3382_v18 = vld [vmem:[%s4367_s7 + $0x1a4] ss:$8 sps:$4 sm:$0xff]  }
 0x297   :  { %2829 = vmatmul.mubr.msk.bf16.vlgmr.msra.gmra.mxu1 %vm110_vm1, %v3596_v19  ;;  %v3316_v19 = vld [vmem:[%s4367_s7 + $0x154] ss:$8 sps:$4 sm:$0xff]  }
 0x298   :  { %1550 = vmatpush1.bf16.msra.mxu0 %v3299_v15  ;;  %1599 = vmatpush1.bf16.msra.mxu1 %v3302_v20  ;;  %v3380_v15 = vld [vmem:[%s4367_s7 + $0x1a0] ss:$8 sps:$4 sm:$0xff]   ;;  %v3385_v20 = vld [vmem:[%s4367_s7 + $0x194] ss:$8 sps:$4 sm:$0xff]  }
 0x299   :  { %1630 = vmatprep.mubr.bf16.mxu1 %v3886_v22  ;;  %1551 = vmatprep.subr.bf16.mxu0 %v3307_v60  ;;  %v3314_v22 = vld [vmem:[%s4367_s7 + $0x150] ss:$8 sps:$4 sm:$0xff]  }
 0x29a   :  { %1600 = vmatprep.subr.bf16.mxu1 %v3310_v61  ;;  %v3383_v60 = vld [vmem:[%s4367_s7 + $0x190] ss:$8 sps:$4 sm:$0xff]   ;;  %v3388_v61 = vld [vmem:[%s4367_s7 + $0x184] ss:$8 sps:$4 sm:$0xff]  }
 0x29c   :  { %1552 = vmatpush1.bf16.msra.mxu0 %v3305_v62  ;;  %1601 = vmatpush1.bf16.msra.mxu1 %v3308_v24  ;;  %v3386_v62 = vld [vmem:[%s4367_s7 + $0x180] ss:$8 sps:$4 sm:$0xff]   ;;  %v3391_v24 = vld [vmem:[%s4368_s11 + $0x70] sm:$0xff]  }
 0x29d   :  { %1553 = vmatprep.subr.bf16.mxu0 %v3313_v1  ;;  %1602 = vmatprep.subr.bf16.mxu1 %v3316_v19  ;;  %v3396_v1 = vld [vmem:[%s4368_s11 + $0x20] sm:$0xff]   ;;  %v3397_v19 = vld [vmem:[%s4368_s11 + $0x58] sm:$0xff]  }
 0x2a0   :  { %1554 = vmatpush1.bf16.msra.mxu0 %v3311_v2  ;;  %1603 = vmatpush1.bf16.msra.mxu1 %v3314_v22  ;;  %v3398_v2 = vld [vmem:[%s4368_s11 + $0x18] sm:$0xff]   ;;  %v3399_v22 = vld [vmem:[%s4368_s11 + $0x50] sm:$0xff]  }
 0x2a1   :  { %1555 = vmatprep.subr.bf16.mxu0 %v3319_v25  ;;  %1604 = vmatprep.subr.bf16.mxu1 %v3322_v26  ;;  %v3400_v25 = vld [vmem:[%s4368_s11 + $0x10] sm:$0xff]   ;;  %v3401_v26 = vld [vmem:[%s4368_s11 + $0x48] sm:$0xff]  }
 0x2a4   :  { %1556 = vmatpush1.bf16.msra.mxu0 %v3317_v28  ;;  %1605 = vmatpush1.bf16.msra.mxu1 %v3320_v29  ;;  %v3402_v28 = vld [vmem:[%s4368_s11 + $0x8] sm:$0xff]   ;;  %v3403_v29 = vld [vmem:[%s4368_s11 + $0x40] sm:$0xff]  }
 0x2a5   :  { %1557 = vmatprep.subr.bf16.mxu0 %v3325_v30  ;;  %1606 = vmatprep.subr.bf16.mxu1 %v3328_v31  ;;  %v3404_v30 = vld [vmem:[%s4368_s11] sm:$0xff]  }
 0x2a8   :  { %1558 = vmatpush1.bf16.msra.mxu0 %v3323_v3  ;;  %1607 = vmatpush1.bf16.msra.mxu1 %v3326_v32 }
 0x2a9   :  { %1559 = vmatprep.subr.bf16.mxu0 %v3331_v4  ;;  %1608 = vmatprep.subr.bf16.mxu1 %v3334_v23 }
 0x2ac   :  { %1560 = vmatpush1.bf16.msra.mxu0 %v3329_v34  ;;  %1609 = vmatpush1.bf16.msra.mxu1 %v3332_v35 }
 0x2ad   :  { %1561 = vmatprep.subr.bf16.mxu0 %v3337_v36  ;;  %1610 = vmatprep.subr.bf16.mxu1 %v3340_v37 }
 0x2b0   :  { %1562 = vmatpush2.bf16.msra.mxu0 %v3335_v38  ;;  %1611 = vmatpush1.bf16.msra.mxu1 %v3338_v39 }
 0x2b1   :  { %1563 = vmatprep.subr.bf16.mxu0 %v3343_v40  ;;  %1612 = vmatprep.subr.bf16.mxu1 %v3346_v41 }
 0x2b4   :  { %1564 = vmatpush2.bf16.msra.mxu0 %v3341_v42  ;;  %1613 = vmatpush1.bf16.msra.mxu1 %v3344_v43 }
 0x2b5   :  { %1565 = vmatprep.subr.bf16.mxu0 %v3349_v44  ;;  %1614 = vmatprep.subr.bf16.mxu1 %v3352_v45  ;;  %v1651_v44 = vld [vmem:[%s4369_s9] sm:$0x3] }
 0x2b8   :  { %1566 = vmatpush2.bf16.msra.mxu0 %v3347_v46  ;;  %1615 = vmatpush2.bf16.msra.mxu1 %v3350_v47 }
 0x2b9   :  { %1567 = vmatprep.subr.bf16.mxu0 %v3355_v48  ;;  %1616 = vmatprep.subr.bf16.mxu1 %v3358_v27 }
 0x2bc   :  { %1568 = vmatpush2.bf16.msra.mxu0 %v3353_v49  ;;  %1617 = vmatpush2.bf16.msra.mxu1 %v3356_v50  ;;  %v1660_v49 = vrot.slane %v1651_v44, %v527_v8 }
 0x2bd   :  { %1569 = vmatprep.subr.bf16.mxu0 %v3361_v51  ;;  %1618 = vmatprep.subr.bf16.mxu1 %v3364_v52  ;;  %v1656_v51 = vrot.slane %v1651_v44, %v523_v5  ;;  %v3405_v44 = vld [vmem:[%s4370_s10 + $0x78] sm:$0xff]  }
 0x2c0   :  { %1570 = vmatpush2.bf16.msra.mxu0 %v3359_v53  ;;  %1619 = vmatpush2.bf16.msra.mxu1 %v3362_v54 }
 0x2c1   :  { %1571 = vmatprep.subr.bf16.mxu0 %v3367_v55  ;;  %1620 = vmatprep.subr.bf16.mxu1 %v3370_v56 }
 0x2c4   :  { %1572 = vmatpush2.bf16.msra.mxu0 %v3365_v57  ;;  %1621 = vmatpush2.bf16.msra.mxu1 %v3368_v6 }
 0x2c5   :  { %1573 = vmatprep.subr.bf16.mxu0 %v3373_v10  ;;  %1622 = vmatprep.subr.bf16.mxu1 %v3376_v11 }
 0x2c8   :  { %1574 = vmatpush2.bf16.msra.mxu0 %v3371_v12  ;;  %1623 = vmatpush2.bf16.msra.mxu1 %v3374_v14 }
 0x2c9   :  { %1575 = vmatprep.subr.bf16.mxu0 %v3379_v17  ;;  %1624 = vmatprep.subr.bf16.mxu1 %v3382_v18 }
 0x2cc   :  { %1576 = vmatpush2.bf16.msra.mxu0 %v3377_v59  ;;  %1625 = vmatpush2.bf16.msra.mxu1 %v3380_v15 }
 0x2cd   :  { %1626 = vmatprep.subr.bf16.mxu1 %v3385_v20 }
 0x2cf   :  { %1578 = vmatmul.mubr.bf16.vlgmr.msra.gmra.mxu0 %v3880_v7  ;;  %v3389_v7 = vld [vmem:[%s4368_s11 + $0x78] sm:$0xff]  }
 0x2d0   :  { %1587 = vmatprep.mubr.bf16.mxu0 %v3894_v13  ;;  %1627 = vmatpush2.bf16.msra.mxu1 %v3383_v60  ;;  %v3390_v13 = vld [vmem:[%s4368_s11 + $0x38] sm:$0xff]  }
 0x2d1   :  { %1628 = vmatprep.subr.bf16.mxu1 %v3388_v61  ;;  %2966 = vmatprep.subr.bf16.mxu0 %v3389_v7 }
 0x2d2   :  { %2967 = vmatpush3.bf16.msra.mxu0 %v3390_v13 }
 0x2d3   :  { %2968 = vmatprep.subr.bf16.mxu0 %v3391_v24 }
 0x2d4   :  { %1629 = vmatpush2.bf16.msra.mxu1 %v3386_v62 }
 0x2d5   :  { %3073 = vmatprep.subr.bf16.mxu1 %v3444_v0 }
 0x2d7   :  { %1588 = vmatmul.mubr.bf16.gmra.mxu0 %v3900_v16  ;;  %1631 = vmatmul.mubr.bf16.vlgmr.msra.gmra.mxu1 %v3882_v9  ;;  %v3392_v9 = vld [vmem:[%s4368_s11 + $0x30] sm:$0xff]   ;;  %v3394_v16 = vld [vmem:[%s4368_s11 + $0x28] sm:$0xff]  }
 0x2d8   :  { %1640 = vmatprep.mubr.bf16.mxu1 %v3896_v33  ;;  %2969 = vmatpush3.bf16.msra.mxu0 %v3392_v9  ;;  %v3393_v33 = vld [vmem:[%s4368_s11 + $0x68] sm:$0xff]  }
 0x2d9   :  { %2970 = vmatprep.subr.bf16.mxu0 %v3393_v33 }
 0x2dc   :  { %2971 = vmatpush3.bf16.msra.mxu0 %v3394_v16 }
 0x2df   :  { %1641 = vmatmul.mubr.bf16.gmra.mxu1 %v3902_v21  ;;  %v3395_v21 = vld [vmem:[%s4368_s11 + $0x60] sm:$0xff]  }
 0x2e0   :  { %3075 = vmatprep.mubr.msk.bf16.mxu1 %vm3445_vm0, %v3444_v0  ;;  %2972 = vmatprep.subr.bf16.mxu0 %v3395_v21 }
 0x2e1   :  { %2973 = vmatpush3.bf16.msra.mxu0 %v3396_v1 }
 0x2e2   :  { %2974 = vmatprep.subr.bf16.mxu0 %v3397_v19 }
 0x2e5   :  { %2975 = vmatpush3.bf16.msra.mxu0 %v3398_v2 }
 0x2e6   :  { %2976 = vmatprep.subr.bf16.mxu0 %v3399_v22 }
 0x2e9   :  { %2977 = vmatpush3.bf16.msra.mxu0 %v3400_v25 }
 0x2ea   :  { %2978 = vmatprep.subr.bf16.mxu0 %v3401_v26 }
 0x2ed   :  { %2979 = vmatpush3.bf16.msra.mxu0 %v3402_v28 }
 0x2ee   :  { %2980 = vmatprep.subr.bf16.mxu0 %v3403_v29 }
 0x2f1   :  { %2981 = vmatpush3.bf16.msra.mxu0 %v3404_v30 }
 0x34f   :  { %v1173_v31 = vpop.f32.mrf.mxu0 }
 0x351   :  { %v1175_v3 = vpop.f32.mrf.mxu0 }
 0x353   :  { %v1177_v32 = vpop.f32.mrf.mxu0 }
 0x355   :  { %v1179_v23 = vpop.f32.mrf.mxu0 }
 0x357   :  { %v1216_v4 = vpop.f32.mrf.mxu1 }
 0x359   :  { %v1218_v34 = vpop.f32.mrf.mxu1 }
 0x35b   :  { %v1220_v36 = vpop.f32.mrf.mxu1 }
 0x35d   :  { %v1222_v39 = vpop.f32.mrf.mxu1 }
 0x38f   :  { %v1579_v35 = vpop.f32.mrf.mxu0 }
 0x390   :  { %v1580_v45 = vadd.f32 %v1579_v35, %v1173_v31 }
 0x391   :  { %v1581_v37 = vpop.f32.mrf.mxu0 }
 0x392   :  { %v1582_v43 = vadd.f32 %v1581_v37, %v1175_v3 }
 0x393   :  { %v1583_v38 = vpop.f32.mrf.mxu0 }
 0x394   :  { %v1584_v48 = vadd.f32 %v1583_v38, %v1177_v32 }
 0x395   :  { %v1585_v40 = vpop.f32.mrf.mxu0 }
 0x396   :  { %v1586_v53 = vadd.f32 %v1585_v40, %v1179_v23 }
 0x397   :  { %v1589_v41 = vpop.f32.mrf.mxu0  ;;  %v1632_v42 = vpop.f32.mrf.mxu1 }
 0x398   :  { %v1633_v50 = vadd.f32 %v1632_v42, %v1580_v45  ;;  %v1590_v18 = vadd.f32 %v1589_v41, %v1216_v4  ;;  %v4177_v41 = vld [vmem:[%s4396_s25] sm:$0xff]  }
 0x399   :  { %v1591_v46 = vpop.f32.mrf.mxu0  ;;  %v1634_v47 = vpop.f32.mrf.mxu1 }
 0x39a   :  { %v1635_v27 = vadd.f32 %v1634_v47, %v1582_v43  ;;  %v1663_v11 = vadd.f32 %v1656_v51, %v1633_v50  ;;  %v1592_v14 = vadd.f32 %v1591_v46, %v1218_v34  ;;  %v3406_v46 = vld [vmem:[%s4370_s10 + $0x38] sm:$0xff]   ;;  %v3407_v47 = vld [vmem:[%s4370_s10 + $0x70] sm:$0xff]   ;;  %v3410_v50 = vld [vmem:[%s4370_s10 + $0x28] sm:$0xff]  }
 0x39b   :  { %v1636_v52 = vpop.f32.mrf.mxu1  ;;  %v1593_v55 = vpop.f32.mrf.mxu0 }
 0x39c   :  { %v1637_v54 = vadd.f32 %v1636_v52, %v1584_v48  ;;  %v1664_v57 = vadd.f32 %v1660_v49, %v1635_v27  ;;  %v1594_v60 = vadd.f32 %v1593_v55, %v1220_v36  ;;  %v1671_v61 = vmax.f32 %v1663_v11, 0.0  ;;  %v4195_v48 = vld [vmem:[%s4396_s25 + $0x8] sm:$0xff]   ;;  %v3408_v27 = vld [vmem:[%s4370_s10 + $0x30] sm:$0xff]   ;;  %v3412_v52 = vld [vmem:[%s4370_s10 + $0x20] sm:$0xff]  }
 0x39d   :  { %v1638_v56 = vpop.f32.mrf.mxu1  ;;  %v1595_v15 = vpop.f32.mrf.mxu0  ;;  %v3415_v55 = vld [vmem:[%s4370_s10 + $0x50] sm:$0xff]   ;;  %v3420_v11 = vld [vmem:[%s4370_s10] sm:$0xff]  }
 0x39e   :  { %v1665_v6 = vadd.f32 %v1656_v51, %v1637_v54  ;;  %v1639_v10 = vadd.f32 %v1638_v56, %v1586_v53  ;;  %v1672_v20 = vmax.f32 %v1664_v57, 0.0  ;;  %v1596_v13 = vadd.f32 %v1595_v15, %v1222_v39  ;;  %v3413_v53 = vld [vmem:[%s4370_s10 + $0x58] sm:$0xff]   ;;  %v3416_v56 = vld [vmem:[%s4370_s10 + $0x10] sm:$0xff]   ;;  %v3417_v57 = vld [vmem:[%s4370_s10 + $0x48] sm:$0xff]  }
 0x39f   :  { %v1642_v12 = vpop.f32.mrf.mxu1  ;;  %v3414_v54 = vld [vmem:[%s4370_s10 + $0x18] sm:$0xff]   ;;  %v3426_v15 = vld [vmem:[%s4371_s14 + $0x10] sm:$0xff]  }
 0x3a0   :  { %v1666_v17 = vadd.f32 %v1660_v49, %v1639_v10  ;;  %v1673_v59 = vmax.f32 %v1665_v6, 0.0  ;;  %v1643_v62 = vadd.f32 %v1642_v12, %v1590_v18  ;;  %v3418_v6 = vld [vmem:[%s4370_s10 + $0x8] sm:$0xff]   ;;  %v3419_v10 = vld [vmem:[%s4370_s10 + $0x40] sm:$0xff]   ;;  %v3421_v12 = vld [vmem:[%s4371_s14 + $0x38] sm:$0xff]  }
 0x3a1   :  { %v1644_v8 = vpop.f32.mrf.mxu1  ;;  %3085 = vmatprep.subr.bf16.mxu0 %v3421_v12  ;;  %v3424_v18 = vld [vmem:[%s4371_s14 + $0x20] sm:$0xff]  }
 0x3a2   :  { %v1674_v63 = vmax.f32 %v1666_v17, 0.0  ;;  %v1645_v5 = vadd.f32 %v1644_v8, %v1592_v14  ;;  %v4170_v33 = vpack.c.bf16 %v1673_v59, %v1671_v61  ;;  %v1667_v2 = vadd.f32 %v1656_v51, %v1643_v62  ;;  %v3422_v14 = vld [vmem:[%s4371_s14 + $0x30] sm:$0xff]   ;;  %v3423_v17 = vld [vmem:[%s4371_s14 + $0x28] sm:$0xff]   ;;  %v3425_v59 = vld [vmem:[%s4371_s14 + $0x18] sm:$0xff]  }
 0x3a3   :  { %v1646_v7 = vpop.f32.mrf.mxu1  ;;  %v3427_v8 = vld [vmem:[%s4371_s14 + $0x8] sm:$0xff]  }
 0x3a4   :  { %v1647_v24 = vadd.f32 %v1646_v7, %v1594_v60  ;;  %v1680_v9 = vpack.c.bf16 %v1674_v63, %v1672_v20  ;;  %v1668_v21 = vadd.f32 %v1660_v49, %v1645_v5  ;;  %v1675_v29 = vmax.f32 %v1667_v2, 0.0  ;;  %v3428_v20 = vld [vmem:[%s4371_s14] sm:$0xff]  }
 0x3a5   :  { %v1648_v16 = vpop.f32.mrf.mxu1 }
 0x3a6   :  { %v1669_v1 = vadd.f32 %v1656_v51, %v1647_v24  ;;  %v1649_v19 = vadd.f32 %v1648_v16, %v1596_v13  ;;  %1875 = vmatprep.mubr.bf16.mxu0 %v1680_v9  ;;  %v1676_v26 = vmax.f32 %v1668_v21, 0.0  ;;  %v3411_v51 = vld [vmem:[%s4370_s10 + $0x60] sm:$0xff]  }
 0x3a7   :  { %1876 = vmatmul.mubr.bf16.vlgmr.msra.gmra.mxu0 %v4170_v33 }
 0x3a8   :  { %v1670_v22 = vadd.f32 %v1660_v49, %v1649_v19  ;;  %v1677_v25 = vmax.f32 %v1669_v1, 0.0  ;;  %v3409_v49 = vld [vmem:[%s4370_s10 + $0x68] sm:$0xff]   ;;  %3086 = vmatpush3.bf16.msra.mxu0 %v3421_v12  ;;  %v2928_v19 = vld [vmem:[%s4372_s12] ss:$0 sm:$0xff] }
 0x3a9   :  { %3087 = vmatprep.subr.bf16.mxu0 %v3422_v14 }
 0x3aa   :  { %v1678_v28 = vmax.f32 %v1670_v22, 0.0  ;;  %v1681_v31 = vpack.c.bf16 %v1677_v25, %v1675_v29 }
 0x3ac   :  { %v1682_v30 = vpack.c.bf16 %v1678_v28, %v1676_v26  ;;  %3088 = vmatpush3.bf16.msra.mxu0 %v3422_v14 }
 0x3ad   :  { %3089 = vmatprep.subr.bf16.mxu0 %v3423_v17 }
 0x3ae   :  { %1883 = vmatprep.mubr.bf16.mxu0 %v1682_v30 }
 0x3af   :  { %1884 = vmatmul.mubr.bf16.gmra.mxu0 %v1681_v31 }
 0x3b0   :  { %3090 = vmatpush3.bf16.msra.mxu0 %v3423_v17 }
 0x3b1   :  { %3091 = vmatprep.subr.bf16.mxu0 %v3424_v18 }
 0x3b4   :  { %3092 = vmatpush3.bf16.msra.mxu0 %v3424_v18 }
 0x3b5   :  { %3093 = vmatprep.subr.bf16.mxu0 %v3425_v59 }
 0x3b8   :  { %3094 = vmatpush3.bf16.msra.mxu0 %v3425_v59 }
 0x3b9   :  { %3095 = vmatprep.subr.bf16.mxu0 %v3426_v15 }
 0x3bc   :  { %3096 = vmatpush3.bf16.msra.mxu0 %v3426_v15 }
 0x3bd   :  { %3097 = vmatprep.subr.bf16.mxu0 %v3427_v8 }
 0x3c0   :  { %3098 = vmatpush3.bf16.msra.mxu0 %v3427_v8 }
 0x3c1   :  { %3099 = vmatprep.subr.bf16.mxu0 %v3428_v20 }
 0x3c4   :  { %3100 = vmatpush3.bf16.msra.mxu0 %v3428_v20 }
 0x3c5   :  { %3105 = vmatprep.subr.bf16.mxu0 %v3444_v0 }
 0x467   :  { %v2982_v3 = vpop.f32.mrf.mxu0 }
 0x469   :  { %v2983_v32 = vpop.f32.mrf.mxu0 }
 0x46a   :  { %v2984_v34 = vadd.f32 %v2983_v32, %v2982_v3 }
 0x46b   :  { %v2985_v4 = vpop.f32.mrf.mxu0 }
 0x46d   :  { %v2986_v23 = vpop.f32.mrf.mxu0 }
 0x46e   :  { %v2987_v35 = vadd.f32 %v2986_v23, %v2985_v4 }
 0x46f   :  { %v2988_v36 = vpop.f32.mrf.mxu0 }
 0x470   :  { %v1892_v37 = vpack.c.bf16 %v2987_v35, %v2984_v34 }
 0x471   :  { %v2989_v38 = vpop.f32.mrf.mxu0 }
 0x472   :  { %3074 = vmatpush3.bf16.msra.mxu1 %v1892_v37  ;;  %v2990_v42 = vadd.f32 %v2989_v38, %v2988_v36 }
 0x473   :  { %v2991_v39 = vpop.f32.mrf.mxu0  ;;  %3079 = vmatprep.subr.bf16.mxu1 %v3444_v0 }
 0x475   :  { %v2992_v40 = vpop.f32.mrf.mxu0  ;;  %3076 = vmatmul.mubr.msk.bf16.vlgmr.msra.gmra.mxu1 %vm110_vm1, %v4177_v41 }
 0x476   :  { %v2993_v43 = vadd.f32 %v2992_v40, %v2991_v39  ;;  %3081 = vmatprep.mubr.msk.bf16.mxu1 %vm3445_vm0, %v3444_v0 }
 0x478   :  { %v1893_v45 = vpack.c.bf16 %v2993_v43, %v2990_v42 }
 0x47a   :  { %3080 = vmatpush3.bf16.msra.mxu1 %v1893_v45  ;;  %v2464_v45 = vld [vmem:[%s4374_s3 + $0x8] sm:$0xff] }
 0x47b   :  { %2998 = vmatprep.subr.bf16.mxu1 %v3405_v44  ;;  %v2463_v44 = vld [vmem:[%s4374_s3] sm:$0xff] }
 0x47c   :  { %2468 = vperm.xlu0 %3170, %v2463_v44   ;;  %v2952_v44 = vld [vmem:[%s4378_s17] ss:$0 sm:$0xff] }
 0x47d   :  { %3082 = vmatmul.mubr.msk.bf16.vlgmr.msra.gmra.mxu1 %vm110_vm1, %v4195_v48 }
 0x47e   :  { %2999 = vmatpush3.bf16.msra.mxu1 %v3406_v46  ;;  %2104 = vmatprep.mubr.bf16.mxu1 %v1680_v9 }
 0x47f   :  { %3000 = vmatprep.subr.bf16.mxu1 %v3407_v47 }
 0x480   :  { %2471 = vperm.xlu0 %3170, %v2464_v45  }
 0x482   :  { %3001 = vmatpush3.bf16.msra.mxu1 %v3408_v27 }
 0x483   :  { %3002 = vmatprep.subr.bf16.mxu1 %v3409_v49 }
 0x486   :  { %3003 = vmatpush3.bf16.msra.mxu1 %v3410_v50 }
 0x487   :  { %3004 = vmatprep.subr.bf16.mxu1 %v3411_v51  ;;  %v3429_v51 = vld [vmem:[%s4373_s13 + $0x38] sm:$0xff]  }
 0x48a   :  { %3005 = vmatpush3.bf16.msra.mxu1 %v3412_v52 }
 0x48b   :  { %3006 = vmatprep.subr.bf16.mxu1 %v3413_v53  ;;  %v3430_v53 = vld [vmem:[%s4373_s13 + $0x30] sm:$0xff]  }
 0x48e   :  { %3007 = vmatpush3.bf16.msra.mxu1 %v3414_v54  ;;  %v3431_v54 = vld [vmem:[%s4373_s13 + $0x28] sm:$0xff]  }
 0x48f   :  { %3008 = vmatprep.subr.bf16.mxu1 %v3415_v55  ;;  %v3432_v55 = vld [vmem:[%s4373_s13 + $0x20] sm:$0xff]  }
 0x492   :  { %3009 = vmatpush3.bf16.msra.mxu1 %v3416_v56  ;;  %v3435_v56 = vld [vmem:[%s4373_s13 + $0x8] sm:$0xff]  }
 0x493   :  { %3010 = vmatprep.subr.bf16.mxu1 %v3417_v57  ;;  %v3436_v57 = vld [vmem:[%s4373_s13] sm:$0xff]  }
 0x496   :  { %3011 = vmatpush3.bf16.msra.mxu1 %v3418_v6 }
 0x497   :  { %3012 = vmatprep.subr.bf16.mxu1 %v3419_v10 }
 0x49a   :  { %3013 = vmatpush3.bf16.msra.mxu1 %v3420_v11 }
 0x49b   :  { %3111 = vmatprep.subr.bf16.mxu1 %v3444_v0 }
 0x49d   :  { %2105 = vmatmul.mubr.bf16.vlgmr.msra.gmra.mxu1 %v4170_v33 }
 0x49e   :  { %2112 = vmatprep.mubr.bf16.mxu1 %v1682_v30 }
 0x4a5   :  { %2113 = vmatmul.mubr.bf16.gmra.mxu1 %v1681_v31 }
 0x4a6   :  { %3113 = vmatprep.mubr.msk.bf16.mxu1 %vm3445_vm0, %v3444_v0 }
 0x535   :  { %v1928_v60 = vpop.f32.mrf.mxu1 }
 0x537   :  { %v3077_v63 = vpop.f32.mrf.mxu1 }
 0x538   :  { %v2466_v63 = vand.u32 127, %v521_v58 }
 0x539   :  { %v1931_v5 = vpop.f32.mrf.mxu1 }
 0x53b   :  { %v3078_v61 = vpop.f32.mrf.mxu1 }
 0x53c   :  { %v2947_v61 = vld [vmem:[%s4376_s15] ss:$0 sm:$0xff] }
 0x53d   :  { %v1969_v62 = vpop.f32.mrf.mxu1 }
 0x53f   :  { %v3083_v7 = vpop.f32.mrf.mxu1 }
 0x541   :  { %v1972_v13 = vpop.f32.mrf.mxu1 }
 0x543   :  { %v3084_v24 = vpop.f32.mrf.mxu1 }
 0x55d   :  { %v3014_v9 = vpop.f32.mrf.mxu1 }
 0x55f   :  { %v3015_v33 = vpop.f32.mrf.mxu1 }
 0x560   :  { %v3016_v16 = vadd.f32 %v3015_v33, %v3014_v9  ;;  %v2469_v9 = vpop.permute.xlu0 %2468 }
 0x561   :  { %v3017_v21 = vpop.f32.mrf.mxu1  ;;  %vm2473_vm3 = vcmp.eq.s32.totalorder %v2466_v63, %v2469_v9 }
 0x562   :  { %v2107_v1 = vadd.f32 %v3016_v16, %v1928_v60 }
 0x563   :  { %v3018_v2 = vpop.f32.mrf.mxu1 }
 0x564   :  { %v3019_v22 = vadd.f32 %v3018_v2, %v3017_v21  ;;  %v2128_v26 = vadd.f32 %v2928_v19, %v2107_v1  ;;  %v2948_v2 = vsel %vm2473_vm3, 1.0, %v3444_v0 }
 0x565   :  { %v3020_v25 = vpop.f32.mrf.mxu1 }
 0x566   :  { %v2110_v28 = vadd.f32 %v3019_v22, %v1931_v5  ;;  %v2132_v32 = vmax.f32 %v2128_v26, 0.0 }
 0x567   :  { %v3021_v29 = vpop.f32.mrf.mxu1 }
 0x568   :  { %v2129_v30 = vadd.f32 %v2928_v19, %v2110_v28  ;;  %v3022_v31 = vadd.f32 %v3021_v29, %v3020_v25  ;;  %v2479_v25 = vpack.c.bf16 %v2948_v2, %v2948_v2  ;;  %v2472_v28 = vpop.permute.xlu0 %2471 }
 0x569   :  { %v3023_v3 = vpop.f32.mrf.mxu1  ;;  %vm2474_vm4 = vcmp.eq.s32.totalorder %v2466_v63, %v2472_v28 }
 0x56a   :  { %v2133_v4 = vmax.f32 %v2129_v30, 0.0  ;;  %v2115_v23 = vadd.f32 %v3022_v31, %v1969_v62  ;;  %v2949_v30 = vsel %vm2474_vm4, 1.0, %v3444_v0  ;;  %v3437_v31 = vld [vmem:[%s4375_s16 + $0x18] sm:$0xff]  }
 0x56b   :  { %v3024_v34 = vpop.f32.mrf.mxu1 }
 0x56c   :  { %v3025_v35 = vadd.f32 %v3024_v34, %v3023_v3  ;;  %v2136_v36 = vpack.c.bf16 %v2133_v4, %v2132_v32  ;;  %v2130_v37 = vadd.f32 %v2928_v19, %v2115_v23  ;;  %v2480_v3 = vpack.c.bf16 %v2949_v30, %v2949_v30  ;;  %v3438_v32 = vld [vmem:[%s4375_s16 + $0x10] sm:$0xff]   ;;  %v3439_v4 = vld [vmem:[%s4375_s16 + $0x8] sm:$0xff]   ;;  %v3440_v23 = vld [vmem:[%s4375_s16] sm:$0xff]  }
 0x56e   :  { %v2118_v38 = vadd.f32 %v3025_v35, %v1972_v13  ;;  %3101 = vmatprep.mubr.bf16.mxu0 %v2136_v36  ;;  %v2134_v40 = vmax.f32 %v2130_v37, 0.0 }
 0x570   :  { %v2131_v39 = vadd.f32 %v2928_v19, %v2118_v38 }
 0x572   :  { %v2135_v42 = vmax.f32 %v2131_v39, 0.0 }
 0x574   :  { %v2137_v43 = vpack.c.bf16 %v2135_v42, %v2134_v40 }
 0x576   :  { %3102 = vmatmul.mubr.bf16.vlgmr.msra.gmra.mxu0 %v2137_v43 }
 0x577   :  { %3107 = vmatprep.mubr.msk.bf16.mxu0 %vm3445_vm0, %v3444_v0 }
 0x636   :  { %v3103_v46 = vpop.f32.mrf.mxu0 }
 0x638   :  { %v2252_v47 = vpop.f32.mrf.mxu0 }
 0x63a   :  { %v3104_v27 = vpop.f32.mrf.mxu0 }
 0x63b   :  { %v2268_v49 = vpack.c.bf16 %v3104_v27, %v3103_v46 }
 0x63c   :  { %v2255_v50 = vpop.f32.mrf.mxu0 }
 0x63d   :  { %v2267_v52 = vpack.c.bf16 %v2255_v50, %v2252_v47  ;;  %3112 = vmatpush3.bf16.msra.mxu1 %v2268_v49  ;;  %v2958_v47 = vld [vmem:[%s4379_s18] ss:$0 sm:$0xff] }
 0x63e   :  { %3137 = vmatprep.subr.bf16.mxu1 %v3444_v0 }
 0x63f   :  { %3106 = vmatpush3.bf16.msra.mxu0 %v2267_v52 }
 0x640   :  { %3117 = vmatprep.subr.bf16.mxu0 %v3429_v51  ;;  %3114 = vmatmul.mubr.msk.bf16.vlgmr.msra.gmra.mxu1 %vm110_vm1, %v4195_v48  ;;  %v3433_v48 = vld [vmem:[%s4373_s13 + $0x18] sm:$0xff]  }
 0x641   :  { %3139 = vmatprep.mubr.msk.bf16.mxu1 %vm3445_vm0, %v3444_v0 }
 0x642   :  { %3108 = vmatmul.mubr.msk.bf16.vlgmr.msra.gmra.mxu0 %vm110_vm1, %v4177_v41  ;;  %v3434_v41 = vld [vmem:[%s4373_s13 + $0x10] sm:$0xff]  }
 0x643   :  { %3118 = vmatpush3.bf16.msra.mxu0 %v3429_v51  ;;  %3133 = vmatprep.mubr.bf16.mxu0 %v2136_v36 }
 0x644   :  { %3119 = vmatprep.subr.bf16.mxu0 %v3430_v53 }
 0x647   :  { %3120 = vmatpush3.bf16.msra.mxu0 %v3430_v53 }
 0x648   :  { %3121 = vmatprep.subr.bf16.mxu0 %v3431_v54 }
 0x64b   :  { %3122 = vmatpush3.bf16.msra.mxu0 %v3431_v54 }
 0x64c   :  { %3123 = vmatprep.subr.bf16.mxu0 %v3432_v55 }
 0x64f   :  { %3124 = vmatpush3.bf16.msra.mxu0 %v3432_v55 }
 0x650   :  { %3125 = vmatprep.subr.bf16.mxu0 %v3433_v48 }
 0x653   :  { %3126 = vmatpush3.bf16.msra.mxu0 %v3433_v48 }
 0x654   :  { %3127 = vmatprep.subr.bf16.mxu0 %v3434_v41 }
 0x657   :  { %3128 = vmatpush3.bf16.msra.mxu0 %v3434_v41  ;;  %v2959_v41 = vld [vmem:[%s4380_s20] ss:$0 sm:$0xff] }
 0x658   :  { %3129 = vmatprep.subr.bf16.mxu0 %v3435_v56 }
 0x65b   :  { %3130 = vmatpush3.bf16.msra.mxu0 %v3435_v56 }
 0x65c   :  { %3131 = vmatprep.subr.bf16.mxu0 %v3436_v57 }
 0x65f   :  { %3132 = vmatpush3.bf16.msra.mxu0 %v3436_v57 }
 0x660   :  { %3161 = vmatprep.subr.bf16.mxu0 %v3444_v0 }
 0x662   :  { %3134 = vmatmul.mubr.bf16.vlgmr.msra.gmra.mxu0 %v2137_v43 }
 0x663   :  { %3163 = vmatprep.mubr.msk.bf16.mxu0 %vm3445_vm0, %v3444_v0 }
 0x700   :  { %v2344_v6 = vpop.f32.mrf.mxu1 }
 0x702   :  { %v2303_v10 = vpop.f32.mrf.mxu0  ;;  %v3115_v11 = vpop.f32.mrf.mxu1 }
 0x704   :  { %v3109_v12 = vpop.f32.mrf.mxu0  ;;  %v2347_v14 = vpop.f32.mrf.mxu1 }
 0x706   :  { %v2306_v17 = vpop.f32.mrf.mxu0  ;;  %v3116_v18 = vpop.f32.mrf.mxu1 }
 0x708   :  { %v3110_v59 = vpop.f32.mrf.mxu0 }
 0x722   :  { %v3135_v15 = vpop.f32.mrf.mxu0 }
 0x723   :  { %v2442_v7 = vadd.f32 %v3135_v15, %v2344_v6 }
 0x724   :  { %v2433_v8 = vpop.f32.mrf.mxu0 }
 0x725   :  { %v2434_v20 = vadd.f32 %v2433_v8, %v2303_v10  ;;  %v2457_v21 = vadd.f32 %v2947_v61, %v2442_v7 }
 0x726   :  { %v3136_v60 = vpop.f32.mrf.mxu0 }
 0x727   :  { %v2445_v5 = vadd.f32 %v3136_v60, %v2347_v14  ;;  %v2455_v13 = vadd.f32 %v2947_v61, %v2434_v20  ;;  %v2461_v26 = vmax.f32 %v2457_v21, 0.0 }
 0x728   :  { %v2436_v62 = vpop.f32.mrf.mxu0 }
 0x729   :  { %v2437_v24 = vadd.f32 %v2436_v62, %v2306_v17  ;;  %v2458_v33 = vadd.f32 %v2947_v61, %v2445_v5  ;;  %v2459_v1 = vmax.f32 %v2455_v13, 0.0 }
 0x72b   :  { %v2456_v16 = vadd.f32 %v2947_v61, %v2437_v24  ;;  %v2462_v22 = vmax.f32 %v2458_v33, 0.0 }
 0x72d   :  { %v2460_v19 = vmax.f32 %v2456_v16, 0.0  ;;  %v2482_v29 = vpack.c.bf16 %v2462_v22, %v2461_v26 }
 0x72f   :  { %v2481_v58 = vpack.c.bf16 %v2460_v19, %v2459_v1 }
 0x731   :  { %3138 = vmatpush3.bf16.msra.mxu1 %v2481_v58 }
 0x732   :  { %3143 = vmatprep.subr.bf16.mxu1 %v3444_v0 }
 0x734   :  { %3140 = vmatmul.mubr.msk.bf16.vlgmr.msra.gmra.mxu1 %vm110_vm1, %v2479_v25 }
 0x735   :  { %3144 = vmatpush3.bf16.msra.mxu1 %v2482_v29  ;;  %3145 = vmatprep.mubr.msk.bf16.mxu1 %vm3445_vm0, %v3444_v0 }
 0x736   :  { %3149 = vmatprep.subr.bf16.mxu1 %v3444_v0 }
 0x73c   :  { %3146 = vmatmul.mubr.msk.bf16.vlgmr.msra.gmra.mxu1 %vm110_vm1, %v2480_v3 }
 0x73d   :  { %3150 = vmatpush3.bf16.msra.mxu1 %v3437_v31  ;;  %3157 = vmatprep.mubr.msk.bf16.mxu1 %vm3445_vm0, %v3444_v0 }
 0x73e   :  { %3151 = vmatprep.subr.bf16.mxu1 %v3444_v0 }
 0x741   :  { %3152 = vmatpush3.bf16.msra.mxu1 %v3438_v32 }
 0x742   :  { %3153 = vmatprep.subr.bf16.mxu1 %v3444_v0 }
 0x745   :  { %3154 = vmatpush3.bf16.msra.mxu1 %v3439_v4 }
 0x746   :  { %3155 = vmatprep.subr.bf16.mxu1 %v3444_v0  ;;  %v3441_v0 = vld [vmem:[%s4377_s19] sm:$0xff]  }
 0x747   :  { %3162 = vmatpush3.bf16.msra.mxu0 %v3441_v0 }
 0x749   :  { %3156 = vmatpush3.bf16.msra.mxu1 %v3440_v23 }
 0x7f4   :  { %v2520_v34 = vpop.f32.mrf.mxu1 }
 0x7f6   :  { %v3141_v35 = vpop.f32.mrf.mxu1 }
 0x7f8   :  { %v2523_v36 = vpop.f32.mrf.mxu1 }
 0x7fa   :  { %v3142_v37 = vpop.f32.mrf.mxu1 }
 0x7fc   :  { %v2563_v38 = vpop.f32.mrf.mxu1 }
 0x7fd   :  { %v2569_v39 = vpack.c.bf16 %v2563_v38, %v2520_v34 }
 0x7fe   :  { %v3147_v40 = vpop.f32.mrf.mxu1 }
 0x7ff   :  { %3158 = vmatmul.mubr.msk.bf16.vlgmr.msra.gmra.mxu1 %vm2609_vm5, %v2569_v39 }
 0x800   :  { %v2566_v42 = vpop.f32.mrf.mxu1 }
 0x802   :  { %v3148_v43 = vpop.f32.mrf.mxu1 }
 0x8bf   :  { %v2647_v45 = vpop.f32.mrf.mxu1 }
 0x8c0   :  { %v2648_v46 = vadd.f32 %v2952_v44, %v2647_v45 }
 0x8c1   :  { %v3159_v27 = vpop.f32.mrf.mxu1 }
 0x8c2   :  { %v2663_v50 = vmul.f32 %v2958_v47, %v2648_v46  ;;  %vm2654_vm6 = vcmp.gt.f32.partialorder %v2648_v46, 0.0 }
 0x8c3   :  { %v2650_v49 = vpop.f32.mrf.mxu1 }
 0x8c4   :  { %v2651_v51 = vadd.f32 %v2952_v44, %v2650_v49  ;;  %v2665_v54 = vsel %vm2654_vm6, %v2648_v46, %v2663_v50 }
 0x8c5   :  { %v3160_v52 = vpop.f32.mrf.mxu1 }
 0x8c6   :  { %vm2655_vm7 = vcmp.gt.f32.partialorder %v2651_v51, 0.0  ;;  %v2664_v53 = vmul.f32 %v2958_v47, %v2651_v51 }
 0x8c8   :  { %v2666_v55 = vsel %vm2655_vm7, %v2651_v51, %v2664_v53 }
 0x8c9   :  { %v2667_v48 = vpack.c.bf16 %v2666_v55, %v2665_v54 }
 0x8cb   :  { %3164 = vmatmul.mubr.msk.bf16.vlgmr.msra.gmra.mxu0 %vm110_vm1, %v2667_v48 }
 0x98b   :  { %v2720_v56 = vpop.f32.mrf.mxu0 }
 0x98c   :  { %v2721_v57 = vadd.f32 %v2959_v41, %v2720_v56 }
 0x98d   :  { %v3165_v6 = vpop.f32.mrf.mxu0 }
 0x98e   :  { %2728 = vst.msk [vmem:[%s4381_s21] sm:$0xff] %vm2727_vm8, %v2721_v57 }
 0x98f   :  { %v2723_v10 = vpop.f32.mrf.mxu0 }
 0x990   :  { %v2724_v11 = vadd.f32 %v2959_v41, %v2723_v10 }
 0x991   :  { %v3166_v12 = vpop.f32.mrf.mxu0 }
 0x992   :  { %2729 = vst.msk [vmem:[%s4381_s21 + $0x8] sm:$0xff] %vm2727_vm8, %v2724_v11 }

</bundles_post_ra>
